<compile_context>
chip_gen: v7x
topology: tpu7x:2x2x1
jax: 0.10.0
libtpu: 0.0.40
codegen_flags: <defaults>
</compile_context>

<pallas_src>
import functools

import jax
import jax.numpy as jnp
from jax import lax
from jax.experimental import pallas as pl
from jax.experimental.pallas import tpu as pltpu


# Tile targets (block bytes stay well under the 32 MiB default scoped VMEM,
# which also covers v7x's 64 MiB physical VMEM with double buffering).
_TM = 512     # row tile for the big matmuls
_TN = 512     # output-column tile
_TK = 768     # contraction tile (fc2 path only; QKV / fc1 use full K)


def _round_up(x, m):
    return ((x + m - 1) // m) * m


def _fit_tile(dim, target, multiple):
    """Largest divisor of `dim` that is <= target and a multiple of `multiple`.

    Falls back to the full dim only when no aligned divisor exists (callers
    pre-pad awkward production dims, e.g. hidden_mlp -> multiple of 512), so
    no silent multi-ten-MB blocks are generated."""
    if dim <= target:
        return dim
    t = (target // multiple) * multiple
    while t >= multiple:
        if dim % t == 0:
            return t
        t -= multiple
    return dim


def _head_group(num_heads, seq, head_dim, itemsize, budget=4 << 20):
    """How many heads to pack per attention grid step (q+k+v block budget)."""
    g = num_heads
    while g > 1 and 3 * g * seq * head_dim * itemsize > budget:
        g -= 1
        while num_heads % g:
            g -= 1
    return g


def _gelu_tanh(x):
    c = 0.7978845608028654  # sqrt(2/pi)
    return 0.5 * x * (1.0 + jnp.tanh(c * (x + 0.044715 * x * x * x)))


# --------------------- fused QKV projection (3 outputs) ---------------------

def _qkv_proj_kernel(x_ref, w_ref, b_ref, q_ref, k_ref, v_ref):
    j = pl.program_id(1)
    y = (jnp.dot(x_ref[...], w_ref[0], preferred_element_type=jnp.float32)
         + b_ref[0].astype(jnp.float32)).astype(q_ref.dtype)

    @pl.when(j == 0)
    def _():
        q_ref[...] = y

    @pl.when(j == 1)
    def _():
        k_ref[...] = y

    @pl.when(j == 2)
    def _():
        v_ref[...] = y


def qkv_proj(x, wqkv, bqkv):
    """x:(M,D) @ wqkv:(3,D,D) + bqkv:(3,1,D) -> (q, k, v), each (M,D).

    Full-K contraction; x stays VMEM-resident across the q/k/v sweep and the
    three projections are emitted as separate arrays (no HBM slice copies)."""
    M, D = x.shape
    tm = _fit_tile(M, _TM, 16)
    out = jax.ShapeDtypeStruct((M, D), x.dtype)
    out_spec = pl.BlockSpec((tm, D), lambda i, j: (i, 0))
    return pl.pallas_call(
        _qkv_proj_kernel,
        out_shape=(out, out, out),
        grid=(M // tm, 3),
        in_specs=[
            pl.BlockSpec((tm, D), lambda i, j: (i, 0)),
            pl.BlockSpec((1, D, D), lambda i, j: (j, 0, 0)),
            pl.BlockSpec((1, 1, D), lambda i, j: (j, 0, 0)),
        ],
        out_specs=(out_spec, out_spec, out_spec),
        compiler_params=pltpu.CompilerParams(
            dimension_semantics=("parallel", "arbitrary")),
    )(x, wqkv, bqkv)


# ------ fused attention + head-merge + out_proj + LayerNorm1 + residual -----

def _attn_merge_kernel(q_ref, k_ref, v_ref, wo_ref, bo_ref, g_ref, bb_ref,
                       r_ref, h_ref, hg_ref, acc_ref, *, eps):
    hb = pl.program_id(1)

    @pl.when(hb == 0)
    def _():
        acc_ref[...] = jnp.zeros_like(acc_ref)

    # Non-online softmax attention for G packed heads (full key length per
    # step) + their contribution to the merged out_proj.  1/sqrt(head_dim) is
    # folded into WQ/bq at init.  Exact normalization (no approx reciprocal).
    seq, out_d = q_ref.shape[1], wo_ref.shape[2]
    part = jnp.zeros((seq, out_d), jnp.float32)
    for g in range(q_ref.shape[0]):                       # static unroll
        q = q_ref[g]                                      # (N, hd) bf16
        k = k_ref[g]
        v = v_ref[g]
        s = lax.dot_general(q, k, (((1,), (1,)), ((), ())),
                            preferred_element_type=jnp.float32)     # (N, N)
        s = s - jnp.max(s, axis=-1, keepdims=True)
        p = jnp.exp(s)
        l = jnp.sum(p, axis=-1, keepdims=True)
        attn = jnp.dot(p.astype(v.dtype), v,
                       preferred_element_type=jnp.float32) / l      # (N, hd)
        part = part + jnp.dot(attn.astype(wo_ref.dtype), wo_ref[g],
                              preferred_element_type=jnp.float32)   # (N, D)
    acc_ref[...] += part

    @pl.when(hb == pl.num_programs(1) - 1)
    def _():
        y = acc_ref[...] + bo_ref[...].astype(jnp.float32)
        mean = jnp.mean(y, axis=-1, keepdims=True)
        var = jnp.mean((y - mean) ** 2, axis=-1, keepdims=True)  # biased (torch LN)
        yn = (y - mean) * lax.rsqrt(var + eps)
        out = (yn * g_ref[...].astype(jnp.float32)
               + bb_ref[...].astype(jnp.float32)
               + r_ref[0].astype(jnp.float32))
        h_ref[0] = out.astype(h_ref.dtype)
        # GELU emitted here once (fc1 input) instead of per fc1 output tile.
        hg_ref[0] = _gelu_tanh(out).astype(hg_ref.dtype)


def attn_out_ln_residual(q, k, v, wo_r, bo, gamma, beta, residual, eps):
    """Per batch: LN(sum_h softmax(q_h k_h^T) v_h @ wo_h + bo)*g + b + residual,
    plus gelu(...) as a second output."""
    BH, Np, hd = q.shape
    H, _, D = wo_r.shape
    B = BH // H
    G = _head_group(H, Np, hd, jnp.dtype(q.dtype).itemsize)
    nhb = H // G
    kern = functools.partial(_attn_merge_kernel, eps=eps)
    qkv_spec = pl.BlockSpec((G, Np, hd), lambda b, hb: (b * nhb + hb, 0, 0))
    vec_spec = pl.BlockSpec((1, D), lambda b, hb: (0, 0))
    bnd_spec = pl.BlockSpec((1, Np, D), lambda b, hb: (b, 0, 0))
    out = jax.ShapeDtypeStruct((B, Np, D), q.dtype)
    return pl.pallas_call(
        kern,
        out_shape=(out, out),
        grid=(B, nhb),
        in_specs=[
            qkv_spec, qkv_spec, qkv_spec,
            pl.BlockSpec((G, hd, D), lambda b, hb: (hb, 0, 0)),
            vec_spec, vec_spec, vec_spec,
            bnd_spec,                                     # residual
        ],
        out_specs=(bnd_spec, bnd_spec),
        scratch_shapes=[pltpu.VMEM((Np, D), jnp.float32)],
        compiler_params=pltpu.CompilerParams(
            dimension_semantics=("parallel", "arbitrary")),
    )(q, k, v, wo_r, bo.reshape(1, D), gamma.reshape(1, D), beta.reshape(1, D),
      residual)


# --------------------------- plain linear (full-K) ---------------------------

def _linear_kernel(x_ref, w_ref, b_ref, o_ref):
    o_ref[...] = (jnp.dot(x_ref[...], w_ref[...],
                          preferred_element_type=jnp.float32)
                  + b_ref[...].astype(jnp.float32)).astype(o_ref.dtype)


def linear(x, w, b):
    """(M,K) @ (K,N) + (N,): full-K contraction, x resident across N sweep."""
    M, K = x.shape
    _, N = w.shape
    tm = _fit_tile(M, _TM, 16)
    tn = _fit_tile(N, _TN, 128)
    return pl.pallas_call(
        _linear_kernel,
        out_shape=jax.ShapeDtypeStruct((M, N), x.dtype),
        grid=(M // tm, N // tn),
        in_specs=[
            pl.BlockSpec((tm, K), lambda i, j: (i, 0)),
            pl.BlockSpec((K, tn), lambda i, j: (0, j)),
            pl.BlockSpec((1, tn), lambda i, j: (0, j)),
        ],
        out_specs=pl.BlockSpec((tm, tn), lambda i, j: (i, j)),
        compiler_params=pltpu.CompilerParams(
            dimension_semantics=("parallel", "parallel")),
    )(x, w, b.reshape(1, N))


# ---------------- matmul + bias + LayerNorm + residual (fc2 path) -----------

def _linear_ln_res_kernel(x_ref, w_ref, b_ref, g_ref, bb_ref, r_ref, o_ref,
                          acc_ref, *, eps):
    kk = pl.program_id(1)

    @pl.when(kk == 0)
    def _():
        acc_ref[...] = jnp.zeros_like(acc_ref)

    acc_ref[...] += jnp.dot(x_ref[...], w_ref[...],
                            preferred_element_type=jnp.float32)

    @pl.when(kk == pl.num_programs(1) - 1)
    def _():
        y = acc_ref[...] + b_ref[...].astype(jnp.float32)
        mean = jnp.mean(y, axis=-1, keepdims=True)
        var = jnp.mean((y - mean) ** 2, axis=-1, keepdims=True)
        yn = (y - mean) * lax.rsqrt(var + eps)
        o_ref[...] = (yn * g_ref[...].astype(jnp.float32)
                      + bb_ref[...].astype(jnp.float32)
                      + r_ref[...].astype(jnp.float32)).astype(o_ref.dtype)


def linear_ln_residual(x, w, b, gamma, beta, residual, eps):
    """LayerNorm(x @ w + b) * gamma + beta + residual (LN over last dim)."""
    M, K = x.shape
    _, N = w.shape
    tm = _fit_tile(M, _TM, 16)
    tk = _fit_tile(K, _TK, 128)
    kern = functools.partial(_linear_ln_res_kernel, eps=eps)
    return pl.pallas_call(
        kern,
        out_shape=jax.ShapeDtypeStruct((M, N), x.dtype),
        grid=(M // tm, K // tk),
        in_specs=[
            pl.BlockSpec((tm, tk), lambda i, kk: (i, kk)),
            pl.BlockSpec((tk, N), lambda i, kk: (kk, 0)),
            pl.BlockSpec((1, N), lambda i, kk: (0, 0)),
            pl.BlockSpec((1, N), lambda i, kk: (0, 0)),
            pl.BlockSpec((1, N), lambda i, kk: (0, 0)),
            pl.BlockSpec((tm, N), lambda i, kk: (i, 0)),
        ],
        out_specs=pl.BlockSpec((tm, N), lambda i, kk: (i, 0)),
        scratch_shapes=[pltpu.VMEM((tm, N), jnp.float32)],
        compiler_params=pltpu.CompilerParams(
            dimension_semantics=("parallel", "arbitrary")),
    )(x, w, b.reshape(1, N), gamma.reshape(1, N), beta.reshape(1, N), residual)


# ---------------------- patch embedding + position embedding ----------------

def _patch_embed_kernel(p_ref, w_ref, b_ref, pos_ref, o_ref):
    o_ref[0] = (jnp.dot(p_ref[0], w_ref[...], preferred_element_type=jnp.float32)
                + b_ref[...].astype(jnp.float32)
                + pos_ref[...].astype(jnp.float32)).astype(o_ref.dtype)


def patch_embed(patches, w, b, pos):
    """patches:(B,N,C*p*p) -> (B,N,D); conv-as-matmul + bias + position emb."""
    B, Np, CPP = patches.shape
    D = w.shape[1]
    return pl.pallas_call(
        _patch_embed_kernel,
        out_shape=jax.ShapeDtypeStruct((B, Np, D), patches.dtype),
        grid=(B,),
        in_specs=[
            pl.BlockSpec((1, Np, CPP), lambda b: (b, 0, 0)),
            pl.BlockSpec((CPP, D), lambda b: (0, 0)),
            pl.BlockSpec((1, D), lambda b: (0, 0)),
            pl.BlockSpec((Np, D), lambda b: (0, 0)),
        ],
        out_specs=pl.BlockSpec((1, Np, D), lambda b: (b, 0, 0)),
        compiler_params=pltpu.CompilerParams(dimension_semantics=("parallel",)),
    )(patches, w, b.reshape(1, D), pos)


# -------------------------------- LayerNorm ----------------------------------

def _ln_kernel(x_ref, g_ref, b_ref, o_ref, *, eps):
    x = x_ref[...].astype(jnp.float32)
    mean = jnp.mean(x, axis=-1, keepdims=True)
    var = jnp.mean((x - mean) ** 2, axis=-1, keepdims=True)
    o_ref[...] = ((x - mean) * lax.rsqrt(var + eps)
                  * g_ref[...].astype(jnp.float32)
                  + b_ref[...].astype(jnp.float32)).astype(o_ref.dtype)


def layernorm(x, gamma, beta, eps):
    M, D = x.shape
    tm = _fit_tile(M, 1024, 16)
    kern = functools.partial(_ln_kernel, eps=eps)
    return pl.pallas_call(
        kern,
        out_shape=jax.ShapeDtypeStruct((M, D), x.dtype),
        grid=(M // tm,),
        in_specs=[
            pl.BlockSpec((tm, D), lambda i: (i, 0)),
            pl.BlockSpec((1, D), lambda i: (0, 0)),
            pl.BlockSpec((1, D), lambda i: (0, 0)),
        ],
        out_specs=pl.BlockSpec((tm, D), lambda i: (i, 0)),
        compiler_params=pltpu.CompilerParams(dimension_semantics=("parallel",)),
    )(x, gamma.reshape(1, D), beta.reshape(1, D))


# ----------------------------- model (JAX glue) ------------------------------

class SiglipConfig:
    def __init__(self, in_channels=3, d_model=32, num_heads=4, n_layers=2,
                 hidden_mlp=64, image_size=16, patch_size=4, eps=1e-6,
                 dtype=jnp.bfloat16):
        assert d_model % num_heads == 0
        self.in_channels = in_channels
        self.d_model = d_model
        self.num_heads = num_heads
        self.head_dim = d_model // num_heads
        self.n_layers = n_layers
        self.hidden_mlp = hidden_mlp
        # Pad the internal MLP hidden dim to a 512 multiple so column/K tiles
        # always have 128-aligned divisors (fixes the 4304-style hazard).
        # Zero-padded fc1 cols / fc2 rows are exact because GELU is before fc1.
        self.hidden_pad = (hidden_mlp if hidden_mlp <= 512
                           else _round_up(hidden_mlp, 512))
        self.image_size = image_size
        self.patch_size = patch_size
        self.eps = eps
        self.dtype = dtype
        self.num_patches = (image_size // patch_size) ** 2


def init_params(key, cfg: SiglipConfig):
    """Deterministic synthetic parameters (weights stored as (in, out), bf16)."""
    def nrm(k, shape, scale=0.02):
        return scale * jax.random.normal(k, shape, dtype=jnp.float32)

    D, H, hd = cfg.d_model, cfg.num_heads, cfg.head_dim
    Hm, Hp = cfg.hidden_mlp, cfg.hidden_pad
    dt = cfg.dtype
    keys = iter(jax.random.split(key, 8 + cfg.n_layers * 16))

    p = {}
    p["patch_w"] = nrm(next(keys), (D, cfg.in_channels, cfg.patch_size,
                                    cfg.patch_size)).astype(dt)   # (O,I,kh,kw)
    p["patch_b"] = nrm(next(keys), (D,)).astype(dt)
    p["pos_emb"] = nrm(next(keys), (cfg.num_patches, D)).astype(dt)
    p["post_ln_g"] = jnp.ones((D,), dt)
    p["post_ln_b"] = jnp.zeros((D,), dt)

    scale = float(hd) ** (-0.5)
    layers = []
    for _ in range(cfg.n_layers):
        wq = nrm(next(keys), (D, D)) * scale     # attention scale folded into WQ/bq
        bq = nrm(next(keys), (D,)) * scale
        wk = nrm(next(keys), (D, D)); bk = nrm(next(keys), (D,))
        wv = nrm(next(keys), (D, D)); bv = nrm(next(keys), (D,))
        wo = nrm(next(keys), (D, D)); bo = nrm(next(keys), (D,))
        w1 = nrm(next(keys), (D, Hm)); b1 = nrm(next(keys), (Hm,))
        w2 = nrm(next(keys), (Hm, D)); b2 = nrm(next(keys), (D,))
        w1 = jnp.pad(w1, ((0, 0), (0, Hp - Hm)))        # exact zero padding
        b1 = jnp.pad(b1, ((0, Hp - Hm),))
        w2 = jnp.pad(w2, ((0, Hp - Hm), (0, 0)))
        layers.append({
            "wqkv": jnp.stack([wq, wk, wv]).astype(dt),              # (3, D, D)
            "bqkv": jnp.stack([bq, bk, bv]).reshape(3, 1, D).astype(dt),
            "wo_r": wo.reshape(H, hd, D).astype(dt),                 # per-head
            "bo": bo.astype(dt),
            "ln1_g": jnp.ones((D,), dt), "ln1_b": jnp.zeros((D,), dt),
            "w1": w1.astype(dt), "b1": b1.astype(dt),
            "w2": w2.astype(dt), "b2": b2.astype(dt),
            "ln2_g": jnp.ones((D,), dt), "ln2_b": jnp.zeros((D,), dt),
        })
    p["layers"] = layers
    return p


def siglip_encoder_layer(x, lp, cfg: SiglipConfig):
    B, Np, D = x.shape
    H, hd = cfg.num_heads, cfg.head_dim
    x2 = x.reshape(B * Np, D)

    # Fused QKV projection; q/k/v emitted as separate arrays (no HBM slices).
    q2, k2, v2 = qkv_proj(x2, lp["wqkv"], lp["bqkv"])
    # Reference quirk: split_heads is a raw .view(B, H, N, hd) -> free reshape.
    q = q2.reshape(B * H, Np, hd)
    k = k2.reshape(B * H, Np, hd)
    v = v2.reshape(B * H, Np, hd)

    # Attention + head-merge + out_proj + LayerNorm1 + residual, fused.
    # gelu(out_norm1) (fc1 input) is emitted as a second output -> GELU once.
    h1, h1g = attn_out_ln_residual(q, k, v, lp["wo_r"], lp["bo"],
                                   lp["ln1_g"], lp["ln1_b"], x, cfg.eps)

    # MLP (reference order: gelu -> fc1 -> fc2), then LayerNorm2 + residual.
    f1 = linear(h1g.reshape(B * Np, D), lp["w1"], lp["b1"])
    out = linear_ln_residual(f1, lp["w2"], lp["b2"], lp["ln2_g"], lp["ln2_b"],
                             h1.reshape(B * Np, D), cfg.eps)
    return out.reshape(B, Np, D)


def siglip_vision_transformer(pixel_values, params, cfg: SiglipConfig):
    B, C, Himg, Wimg = pixel_values.shape
    ps = cfg.patch_size
    Hp, Wp = Himg // ps, Wimg // ps
    Np = Hp * Wp
    D = cfg.d_model

    x = pixel_values.astype(cfg.dtype)
    # Conv2d(kernel=stride=patch, padding=valid) == per-patch linear in
    # (C, kh, kw) order (patchify done with free XLA reshapes/transposes).
    x = x.reshape(B, C, Hp, ps, Wp, ps)
    x = jnp.transpose(x, (0, 2, 4, 1, 3, 5)).reshape(B, Np, C * ps * ps)
    w_patch = params["patch_w"].reshape(D, C * ps * ps).T       # (C*p*p, D)
    emb = patch_embed(x, w_patch, params["patch_b"], params["pos_emb"])

    # Reference quirk reproduced: every layer receives the ORIGINAL embedding;
    # only the last layer's output survives (XLA will DCE the others).
    out = emb
    for lp in params["layers"]:
        out = siglip_encoder_layer(emb, lp, cfg)

    out2 = layernorm(out.reshape(B * Np, D), params["post_ln_g"],
                     params["post_ln_b"], cfg.eps)
    return out2.reshape(B, Np, D)


# ----------------------------------- main ------------------------------------

if __name__ == "__main__":
    cfg = SiglipConfig(in_channels=3, d_model=32, num_heads=4, n_layers=2,
                       hidden_mlp=64, image_size=16, patch_size=4, eps=1e-6)

    key = jax.random.PRNGKey(0)
    k_params, k_input = jax.random.split(key)
    params = init_params(k_params, cfg)

    # NCHW pixel values, small shapes: (B=2, C=3, H=16, W=16) -> 16 patches
    pixel_values = jax.random.normal(
        k_input, (2, cfg.in_channels, cfg.image_size, cfg.image_size),
        dtype=jnp.float32)

    fwd = jax.jit(functools.partial(siglip_vision_transformer, cfg=cfg))
    out = fwd(pixel_values, params)
    out = jax.block_until_ready(out)

    assert out.shape == (2, cfg.num_patches, cfg.d_model), out.shape
    assert bool(jnp.all(jnp.isfinite(out.astype(jnp.float32))))
    print("KERNEL_OK")
</pallas_src>

<mosaic_0001>
module attributes {stable_mosaic.version = 11 : i64} {
  func.func @_patch_embed_kernel(%arg0: i32, %arg1: memref<1x16x48xbf16, #tpu.memory_space<vmem>>, %arg2: memref<48x32xbf16, #tpu.memory_space<vmem>>, %arg3: memref<1x32xbf16, #tpu.memory_space<vmem>>, %arg4: memref<16x32xbf16, #tpu.memory_space<vmem>>, %arg5: memref<1x16x32xbf16, #tpu.memory_space<vmem>>) attributes {dimension_semantics = [#tpu.dimension_semantics<parallel>], iteration_bounds = array<i64: 2>, scalar_prefetch = 0 : i64, scratch_operands = 0 : i64, tpu.core_type = #tpu.core_type<tc>, window_params = [{transform_indices = @transform_0, window_bounds = array<i64: 1, 16, 48>}, {pipeline_mode = #tpu.pipeline_mode<synchronous>, transform_indices = @transform_1, window_bounds = array<i64: 48, 32>}, {pipeline_mode = #tpu.pipeline_mode<synchronous>, transform_indices = @transform_2, window_bounds = array<i64: 1, 32>}, {pipeline_mode = #tpu.pipeline_mode<synchronous>, transform_indices = @transform_3, window_bounds = array<i64: 16, 32>}, {transform_indices = @transform_4, window_bounds = array<i64: 1, 16, 32>}]} {
    %c0 = arith.constant 0 : index
    %c0_0 = arith.constant 0 : index
    %c0_1 = arith.constant 0 : index
    %0 = vector.load %arg1[%c0, %c0_0, %c0_1] : memref<1x16x48xbf16, #tpu.memory_space<vmem>>, vector<1x16x48xbf16>
    %1 = vector.shape_cast %0 : vector<1x16x48xbf16> to vector<16x48xbf16>
    %c0_2 = arith.constant 0 : index
    %c0_3 = arith.constant 0 : index
    %2 = vector.load %arg2[%c0_2, %c0_3] : memref<48x32xbf16, #tpu.memory_space<vmem>>, vector<48x32xbf16>
    %cst = arith.constant dense<0.000000e+00> : vector<16x32xf32>
    %3 = tpu.matmul %1, %2, %cst {dimension_numbers = #tpu.dot_dimension_numbers<[1], [0], [0], [1], [0, 0, 1, 1], [], []>} : vector<16x48xbf16>, vector<48x32xbf16>, vector<16x32xf32> -> vector<16x32xf32>
    %c0_4 = arith.constant 0 : index
    %c0_5 = arith.constant 0 : index
    %4 = vector.load %arg3[%c0_4, %c0_5] : memref<1x32xbf16, #tpu.memory_space<vmem>>, vector<1x32xbf16>
    %5 = arith.extf %4 : vector<1x32xbf16> to vector<1x32xf32>
    %6 = vector.broadcast %5 : vector<1x32xf32> to vector<16x32xf32>
    %7 = arith.addf %3, %6 : vector<16x32xf32>
    %c0_6 = arith.constant 0 : index
    %c0_7 = arith.constant 0 : index
    %8 = vector.load %arg4[%c0_6, %c0_7] : memref<16x32xbf16, #tpu.memory_space<vmem>>, vector<16x32xbf16>
    %9 = arith.extf %8 : vector<16x32xbf16> to vector<16x32xf32>
    %10 = arith.addf %7, %9 : vector<16x32xf32>
    %11 = arith.truncf %10 : vector<16x32xf32> to vector<16x32xbf16>
    %c0_8 = arith.constant 0 : index
    %c0_9 = arith.constant 0 : index
    %c0_10 = arith.constant 0 : index
    %12 = vector.load %arg5[%c0_8, %c0_9, %c0_10] : memref<1x16x32xbf16, #tpu.memory_space<vmem>>, vector<1x16x32xbf16>
    %13 = vector.shape_cast %12 : vector<1x16x32xbf16> to vector<16x32xbf16>
    %14 = vector.shape_cast %11 : vector<16x32xbf16> to vector<1x16x32xbf16>
    tpu.vector_store %arg5[%c0_8, %c0_9, %c0_10], %14 {strides = array<i32>} : memref<1x16x32xbf16, #tpu.memory_space<vmem>>, vector<1x16x32xbf16>,
    return
  }
  func.func @transform_0(%arg0: i32) -> (i32, i32, i32) {
    %c0_i32 = arith.constant 0 : i32
    %c0_i32_0 = arith.constant 0 : i32
    %c0_i32_1 = arith.constant 0 : i32
    return %arg0, %c0_i32, %c0_i32_0 : i32, i32, i32
  }
  func.func @transform_1(%arg0: i32) -> (i32, i32) {
    %c0_i32 = arith.constant 0 : i32
    %c0_i32_0 = arith.constant 0 : i32
    %c0_i32_1 = arith.constant 0 : i32
    return %c0_i32, %c0_i32_0 : i32, i32
  }
  func.func @transform_2(%arg0: i32) -> (i32, i32) {
    %c0_i32 = arith.constant 0 : i32
    %c0_i32_0 = arith.constant 0 : i32
    %c0_i32_1 = arith.constant 0 : i32
    return %c0_i32, %c0_i32_0 : i32, i32
  }
  func.func @transform_3(%arg0: i32) -> (i32, i32) {
    %c0_i32 = arith.constant 0 : i32
    %c0_i32_0 = arith.constant 0 : i32
    %c0_i32_1 = arith.constant 0 : i32
    return %c0_i32, %c0_i32_0 : i32, i32
  }
  func.func @transform_4(%arg0: i32) -> (i32, i32, i32) {
    %c0_i32 = arith.constant 0 : i32
    %c0_i32_0 = arith.constant 0 : i32
    %c0_i32_1 = arith.constant 0 : i32
    return %arg0, %c0_i32, %c0_i32_0 : i32, i32, i32
  }
}

module attributes {stable_mosaic.version = 11 : i64} {
  func.func @_linear_kernel(%arg0: i32, %arg1: i32, %arg2: memref<32x32xbf16, #tpu.memory_space<vmem>>, %arg3: memref<32x64xbf16, #tpu.memory_space<vmem>>, %arg4: memref<1x64xbf16, #tpu.memory_space<vmem>>, %arg5: memref<32x64xbf16, #tpu.memory_space<vmem>>) attributes {dimension_semantics = [#tpu.dimension_semantics<parallel>, #tpu.dimension_semantics<parallel>], iteration_bounds = array<i64: 1, 1>, scalar_prefetch = 0 : i64, scratch_operands = 0 : i64, tpu.core_type = #tpu.core_type<tc>, window_params = [{transform_indices = @transform_0, window_bounds = array<i64: 32, 32>}, {transform_indices = @transform_1, window_bounds = array<i64: 32, 64>}, {transform_indices = @transform_2, window_bounds = array<i64: 1, 64>}, {transform_indices = @transform_3, window_bounds = array<i64: 32, 64>}]} {
    %c0 = arith.constant 0 : index
    %c0_0 = arith.constant 0 : index
    %0 = vector.load %arg2[%c0, %c0_0] : memref<32x32xbf16, #tpu.memory_space<vmem>>, vector<32x32xbf16>
    %c0_1 = arith.constant 0 : index
    %c0_2 = arith.constant 0 : index
    %1 = vector.load %arg3[%c0_1, %c0_2] : memref<32x64xbf16, #tpu.memory_space<vmem>>, vector<32x64xbf16>
    %cst = arith.constant dense<0.000000e+00> : vector<32x64xf32>
    %2 = tpu.matmul %0, %1, %cst {dimension_numbers = #tpu.dot_dimension_numbers<[1], [0], [0], [1], [0, 0, 1, 1], [], []>} : vector<32x32xbf16>, vector<32x64xbf16>, vector<32x64xf32> -> vector<32x64xf32>
    %c0_3 = arith.constant 0 : index
    %c0_4 = arith.constant 0 : index
    %3 = vector.load %arg4[%c0_3, %c0_4] : memref<1x64xbf16, #tpu.memory_space<vmem>>, vector<1x64xbf16>
    %4 = arith.extf %3 : vector<1x64xbf16> to vector<1x64xf32>
    %5 = vector.broadcast %4 : vector<1x64xf32> to vector<32x64xf32>
    %6 = arith.addf %2, %5 : vector<32x64xf32>
    %7 = arith.truncf %6 : vector<32x64xf32> to vector<32x64xbf16>
    %c0_5 = arith.constant 0 : index
    %c0_6 = arith.constant 0 : index
    %8 = vector.load %arg5[%c0_5, %c0_6] : memref<32x64xbf16, #tpu.memory_space<vmem>>, vector<32x64xbf16>
    tpu.vector_store %arg5[%c0_5, %c0_6], %7 {strides = array<i32>} : memref<32x64xbf16, #tpu.memory_space<vmem>>, vector<32x64xbf16>,
    return
  }
  func.func @transform_0(%arg0: i32, %arg1: i32) -> (i32, i32) {
    %c0_i32 = arith.constant 0 : i32
    %c0_i32_0 = arith.constant 0 : i32
    return %arg0, %c0_i32 : i32, i32
  }
  func.func @transform_1(%arg0: i32, %arg1: i32) -> (i32, i32) {
    %c0_i32 = arith.constant 0 : i32
    %c0_i32_0 = arith.constant 0 : i32
    return %c0_i32, %arg1 : i32, i32
  }
  func.func @transform_2(%arg0: i32, %arg1: i32) -> (i32, i32) {
    %c0_i32 = arith.constant 0 : i32
    %c0_i32_0 = arith.constant 0 : i32
    return %c0_i32, %arg1 : i32, i32
  }
  func.func @transform_3(%arg0: i32, %arg1: i32) -> (i32, i32) {
    %c0_i32 = arith.constant 0 : i32
    return %arg0, %arg1 : i32, i32
  }
}

module attributes {stable_mosaic.version = 11 : i64} {
  func.func @_qkv_proj_kernel(%arg0: i32, %arg1: i32, %arg2: memref<32x32xbf16, #tpu.memory_space<vmem>>, %arg3: memref<1x32x32xbf16, #tpu.memory_space<vmem>>, %arg4: memref<1x1x32xbf16, #tpu.memory_space<vmem>>, %arg5: memref<32x32xbf16, #tpu.memory_space<vmem>>, %arg6: memref<32x32xbf16, #tpu.memory_space<vmem>>, %arg7: memref<32x32xbf16, #tpu.memory_space<vmem>>) attributes {dimension_semantics = [#tpu.dimension_semantics<parallel>, #tpu.dimension_semantics<arbitrary>], iteration_bounds = array<i64: 1, 3>, scalar_prefetch = 0 : i64, scratch_operands = 0 : i64, tpu.core_type = #tpu.core_type<tc>, window_params = [{transform_indices = @transform_0, window_bounds = array<i64: 32, 32>}, {transform_indices = @transform_1, window_bounds = array<i64: 1, 32, 32>}, {transform_indices = @transform_2, window_bounds = array<i64: 1, 1, 32>}, {transform_indices = @transform_3, window_bounds = array<i64: 32, 32>}, {transform_indices = @transform_4, window_bounds = array<i64: 32, 32>}, {transform_indices = @transform_5, window_bounds = array<i64: 32, 32>}]} {
    %c0 = arith.constant 0 : index
    %c0_0 = arith.constant 0 : index
    %0 = vector.load %arg2[%c0, %c0_0] : memref<32x32xbf16, #tpu.memory_space<vmem>>, vector<32x32xbf16>
    %c0_1 = arith.constant 0 : index
    %c0_2 = arith.constant 0 : index
    %c0_3 = arith.constant 0 : index
    %1 = vector.load %arg3[%c0_1, %c0_2, %c0_3] : memref<1x32x32xbf16, #tpu.memory_space<vmem>>, vector<1x32x32xbf16>
    %2 = vector.shape_cast %1 : vector<1x32x32xbf16> to vector<32x32xbf16>
    %cst = arith.constant dense<0.000000e+00> : vector<32x32xf32>
    %3 = tpu.matmul %0, %2, %cst {dimension_numbers = #tpu.dot_dimension_numbers<[1], [0], [0], [1], [0, 0, 1, 1], [], []>} : vector<32x32xbf16>, vector<32x32xbf16>, vector<32x32xf32> -> vector<32x32xf32>
    %c0_4 = arith.constant 0 : index
    %c0_5 = arith.constant 0 : index
    %c0_6 = arith.constant 0 : index
    %4 = vector.load %arg4[%c0_4, %c0_5, %c0_6] : memref<1x1x32xbf16, #tpu.memory_space<vmem>>, vector<1x1x32xbf16>
    %5 = vector.shape_cast %4 : vector<1x1x32xbf16> to vector<1x32xbf16>
    %6 = arith.extf %5 : vector<1x32xbf16> to vector<1x32xf32>
    %7 = vector.broadcast %6 : vector<1x32xf32> to vector<32x32xf32>
    %8 = arith.addf %3, %7 : vector<32x32xf32>
    %9 = arith.truncf %8 : vector<32x32xf32> to vector<32x32xbf16>
    %c0_i32 = arith.constant 0 : i32
    %10 = arith.cmpi eq, %arg1, %c0_i32 : i32
    %11 = arith.extui %10 : i1 to i32
    %c0_i32_7 = arith.constant 0 : i32
    %12 = arith.cmpi ne, %11, %c0_i32_7 : i32
    scf.if %12 {
      %c0_10 = arith.constant 0 : index
      %c0_11 = arith.constant 0 : index
      %19 = vector.load %arg5[%c0_10, %c0_11] : memref<32x32xbf16, #tpu.memory_space<vmem>>, vector<32x32xbf16>
      tpu.vector_store %arg5[%c0_10, %c0_11], %9 {strides = array<i32>} : memref<32x32xbf16, #tpu.memory_space<vmem>>, vector<32x32xbf16>,
    } else {
    }
    %c1_i32 = arith.constant 1 : i32
    %13 = arith.cmpi eq, %arg1, %c1_i32 : i32
    %14 = arith.extui %13 : i1 to i32
    %c0_i32_8 = arith.constant 0 : i32
    %15 = arith.cmpi ne, %14, %c0_i32_8 : i32
    scf.if %15 {
      %c0_10 = arith.constant 0 : index
      %c0_11 = arith.constant 0 : index
      %19 = vector.load %arg6[%c0_10, %c0_11] : memref<32x32xbf16, #tpu.memory_space<vmem>>, vector<32x32xbf16>
      tpu.vector_store %arg6[%c0_10, %c0_11], %9 {strides = array<i32>} : memref<32x32xbf16, #tpu.memory_space<vmem>>, vector<32x32xbf16>,
    } else {
    }
    %c2_i32 = arith.constant 2 : i32
    %16 = arith.cmpi eq, %arg1, %c2_i32 : i32
    %17 = arith.extui %16 : i1 to i32
    %c0_i32_9 = arith.constant 0 : i32
    %18 = arith.cmpi ne, %17, %c0_i32_9 : i32
    scf.if %18 {
      %c0_10 = arith.constant 0 : index
      %c0_11 = arith.constant 0 : index
      %19 = vector.load %arg7[%c0_10, %c0_11] : memref<32x32xbf16, #tpu.memory_space<vmem>>, vector<32x32xbf16>
      tpu.vector_store %arg7[%c0_10, %c0_11], %9 {strides = array<i32>} : memref<32x32xbf16, #tpu.memory_space<vmem>>, vector<32x32xbf16>,
    } else {
    }
    return
  }
  func.func @transform_0(%arg0: i32, %arg1: i32) -> (i32, i32) {
    %c0_i32 = arith.constant 0 : i32
    %c0_i32_0 = arith.constant 0 : i32
    return %arg0, %c0_i32 : i32, i32
  }
  func.func @transform_1(%arg0: i32, %arg1: i32) -> (i32, i32, i32) {
    %c0_i32 = arith.constant 0 : i32
    %c0_i32_0 = arith.constant 0 : i32
    %c0_i32_1 = arith.constant 0 : i32
    return %arg1, %c0_i32, %c0_i32_0 : i32, i32, i32
  }
  func.func @transform_2(%arg0: i32, %arg1: i32) -> (i32, i32, i32) {
    %c0_i32 = arith.constant 0 : i32
    %c0_i32_0 = arith.constant 0 : i32
    %c0_i32_1 = arith.constant 0 : i32
    return %arg1, %c0_i32, %c0_i32_0 : i32, i32, i32
  }
  func.func @transform_3(%arg0: i32, %arg1: i32) -> (i32, i32) {
    %c0_i32 = arith.constant 0 : i32
    %c0_i32_0 = arith.constant 0 : i32
    return %arg0, %c0_i32 : i32, i32
  }
  func.func @transform_4(%arg0: i32, %arg1: i32) -> (i32, i32) {
    %c0_i32 = arith.constant 0 : i32
    %c0_i32_0 = arith.constant 0 : i32
    return %arg0, %c0_i32 : i32, i32
  }
  func.func @transform_5(%arg0: i32, %arg1: i32) -> (i32, i32) {
    %c0_i32 = arith.constant 0 : i32
    %c0_i32_0 = arith.constant 0 : i32
    return %arg0, %c0_i32 : i32, i32
  }
}

module attributes {stable_mosaic.version = 11 : i64} {
  func.func @_attn_merge_kernel(%arg0: i32, %arg1: i32, %arg2: memref<4x16x8xbf16, #tpu.memory_space<vmem>>, %arg3: memref<4x16x8xbf16, #tpu.memory_space<vmem>>, %arg4: memref<4x16x8xbf16, #tpu.memory_space<vmem>>, %arg5: memref<4x8x32xbf16, #tpu.memory_space<vmem>>, %arg6: memref<1x32xbf16, #tpu.memory_space<vmem>>, %arg7: memref<1x32xbf16, #tpu.memory_space<vmem>>, %arg8: memref<1x32xbf16, #tpu.memory_space<vmem>>, %arg9: memref<1x16x32xbf16, #tpu.memory_space<vmem>>, %arg10: memref<1x16x32xbf16, #tpu.memory_space<vmem>>, %arg11: memref<1x16x32xbf16, #tpu.memory_space<vmem>>, %arg12: memref<16x32xf32, #tpu.memory_space<vmem>>) attributes {dimension_semantics = [#tpu.dimension_semantics<parallel>, #tpu.dimension_semantics<arbitrary>], iteration_bounds = array<i64: 2, 1>, scalar_prefetch = 0 : i64, scratch_operands = 1 : i64, tpu.core_type = #tpu.core_type<tc>, window_params = [{transform_indices = @transform_0, window_bounds = array<i64: 4, 16, 8>}, {transform_indices = @transform_1, window_bounds = array<i64: 4, 16, 8>}, {transform_indices = @transform_2, window_bounds = array<i64: 4, 16, 8>}, {transform_indices = @transform_3, window_bounds = array<i64: 4, 8, 32>}, {pipeline_mode = #tpu.pipeline_mode<synchronous>, transform_indices = @transform_4, window_bounds = array<i64: 1, 32>}, {pipeline_mode = #tpu.pipeline_mode<synchronous>, transform_indices = @transform_5, window_bounds = array<i64: 1, 32>}, {pipeline_mode = #tpu.pipeline_mode<synchronous>, transform_indices = @transform_6, window_bounds = array<i64: 1, 32>}, {transform_indices = @transform_7, window_bounds = array<i64: 1, 16, 32>}, {transform_indices = @transform_8, window_bounds = array<i64: 1, 16, 32>}, {transform_indices = @transform_9, window_bounds = array<i64: 1, 16, 32>}]} {
    %c0_i32 = arith.constant 0 : i32
    %0 = arith.cmpi eq, %arg1, %c0_i32 : i32
    %1 = arith.extui %0 : i1 to i32
    %c0_i32_0 = arith.constant 0 : i32
    %2 = arith.cmpi ne, %1, %c0_i32_0 : i32
    scf.if %2 {
      %cst_71 = arith.constant 0.000000e+00 : f32
      %102 = vector.broadcast %cst_71 : f32 to vector<16x32xf32>
      %c0_72 = arith.constant 0 : index
      %c0_73 = arith.constant 0 : index
      %103 = vector.load %arg12[%c0_72, %c0_73] : memref<16x32xf32, #tpu.memory_space<vmem>>, vector<16x32xf32>
      tpu.vector_store %arg12[%c0_72, %c0_73], %102 {strides = array<i32>} : memref<16x32xf32, #tpu.memory_space<vmem>>, vector<16x32xf32>,
    } else {
    }
    %cst = arith.constant 0.000000e+00 : f32
    %3 = vector.broadcast %cst : f32 to vector<16x32xf32>
    %c0 = arith.constant 0 : index
    %c0_1 = arith.constant 0 : index
    %c0_2 = arith.constant 0 : index
    %4 = vector.load %arg2[%c0, %c0_1, %c0_2] : memref<4x16x8xbf16, #tpu.memory_space<vmem>>, vector<1x16x8xbf16>
    %5 = vector.shape_cast %4 : vector<1x16x8xbf16> to vector<16x8xbf16>
    %c0_3 = arith.constant 0 : index
    %c0_4 = arith.constant 0 : index
    %c0_5 = arith.constant 0 : index
    %6 = vector.load %arg3[%c0_3, %c0_4, %c0_5] : memref<4x16x8xbf16, #tpu.memory_space<vmem>>, vector<1x16x8xbf16>
    %7 = vector.shape_cast %6 : vector<1x16x8xbf16> to vector<16x8xbf16>
    %c0_6 = arith.constant 0 : index
    %c0_7 = arith.constant 0 : index
    %c0_8 = arith.constant 0 : index
    %8 = vector.load %arg4[%c0_6, %c0_7, %c0_8] : memref<4x16x8xbf16, #tpu.memory_space<vmem>>, vector<1x16x8xbf16>
    %9 = vector.shape_cast %8 : vector<1x16x8xbf16> to vector<16x8xbf16>
    %cst_9 = arith.constant dense<0.000000e+00> : vector<16x16xf32>
    %10 = tpu.matmul %5, %7, %cst_9 {dimension_numbers = #tpu.dot_dimension_numbers<[1], [1], [0], [0], [0, 0, 1, 0], [], []>} : vector<16x8xbf16>, vector<16x8xbf16>, vector<16x16xf32> -> vector<16x16xf32>
    %cst_10 = arith.constant dense<0xFF800000> : vector<16xf32>
    %11 = vector.multi_reduction <maximumf>, %10, %cst_10 [1] : vector<16x16xf32> to vector<16xf32>
    %12 = vector.shape_cast %11 : vector<16xf32> to vector<16x1xf32>
    %13 = vector.broadcast %12 : vector<16x1xf32> to vector<16x16xf32>
    %14 = arith.subf %10, %13 : vector<16x16xf32>
    %15 = math.exp %14 : vector<16x16xf32>
    %cst_11 = arith.constant dense<0.000000e+00> : vector<16xf32>
    %16 = vector.multi_reduction <add>, %15, %cst_11 [1] : vector<16x16xf32> to vector<16xf32>
    %17 = vector.shape_cast %16 : vector<16xf32> to vector<16x1xf32>
    %18 = arith.truncf %15 : vector<16x16xf32> to vector<16x16xbf16>
    %cst_12 = arith.constant dense<0.000000e+00> : vector<16x8xf32>
    %19 = tpu.matmul %18, %9, %cst_12 {dimension_numbers = #tpu.dot_dimension_numbers<[1], [0], [0], [1], [0, 0, 1, 1], [], []>} : vector<16x16xbf16>, vector<16x8xbf16>, vector<16x8xf32> -> vector<16x8xf32>
    %20 = vector.broadcast %17 : vector<16x1xf32> to vector<16x8xf32>
    %21 = arith.divf %19, %20 : vector<16x8xf32>
    %22 = arith.truncf %21 : vector<16x8xf32> to vector<16x8xbf16>
    %c0_13 = arith.constant 0 : index
    %c0_14 = arith.constant 0 : index
    %c0_15 = arith.constant 0 : index
    %23 = vector.load %arg5[%c0_13, %c0_14, %c0_15] : memref<4x8x32xbf16, #tpu.memory_space<vmem>>, vector<1x8x32xbf16>
    %24 = vector.shape_cast %23 : vector<1x8x32xbf16> to vector<8x32xbf16>
    %cst_16 = arith.constant dense<0.000000e+00> : vector<16x32xf32>
    %25 = tpu.matmul %22, %24, %cst_16 {dimension_numbers = #tpu.dot_dimension_numbers<[1], [0], [0], [1], [0, 0, 1, 1], [], []>} : vector<16x8xbf16>, vector<8x32xbf16>, vector<16x32xf32> -> vector<16x32xf32>
    %26 = arith.addf %3, %25 : vector<16x32xf32>
    %c1 = arith.constant 1 : index
    %c0_17 = arith.constant 0 : index
    %c0_18 = arith.constant 0 : index
    %27 = vector.load %arg2[%c1, %c0_17, %c0_18] : memref<4x16x8xbf16, #tpu.memory_space<vmem>>, vector<1x16x8xbf16>
    %28 = vector.shape_cast %27 : vector<1x16x8xbf16> to vector<16x8xbf16>
    %c1_19 = arith.constant 1 : index
    %c0_20 = arith.constant 0 : index
    %c0_21 = arith.constant 0 : index
    %29 = vector.load %arg3[%c1_19, %c0_20, %c0_21] : memref<4x16x8xbf16, #tpu.memory_space<vmem>>, vector<1x16x8xbf16>
    %30 = vector.shape_cast %29 : vector<1x16x8xbf16> to vector<16x8xbf16>
    %c1_22 = arith.constant 1 : index
    %c0_23 = arith.constant 0 : index
    %c0_24 = arith.constant 0 : index
    %31 = vector.load %arg4[%c1_22, %c0_23, %c0_24] : memref<4x16x8xbf16, #tpu.memory_space<vmem>>, vector<1x16x8xbf16>
    %32 = vector.shape_cast %31 : vector<1x16x8xbf16> to vector<16x8xbf16>
    %cst_25 = arith.constant dense<0.000000e+00> : vector<16x16xf32>
    %33 = tpu.matmul %28, %30, %cst_25 {dimension_numbers = #tpu.dot_dimension_numbers<[1], [1], [0], [0], [0, 0, 1, 0], [], []>} : vector<16x8xbf16>, vector<16x8xbf16>, vector<16x16xf32> -> vector<16x16xf32>
    %cst_26 = arith.constant dense<0xFF800000> : vector<16xf32>
    %34 = vector.multi_reduction <maximumf>, %33, %cst_26 [1] : vector<16x16xf32> to vector<16xf32>
    %35 = vector.shape_cast %34 : vector<16xf32> to vector<16x1xf32>
    %36 = vector.broadcast %35 : vector<16x1xf32> to vector<16x16xf32>
    %37 = arith.subf %33, %36 : vector<16x16xf32>
    %38 = math.exp %37 : vector<16x16xf32>
    %cst_27 = arith.constant dense<0.000000e+00> : vector<16xf32>
    %39 = vector.multi_reduction <add>, %38, %cst_27 [1] : vector<16x16xf32> to vector<16xf32>
    %40 = vector.shape_cast %39 : vector<16xf32> to vector<16x1xf32>
    %41 = arith.truncf %38 : vector<16x16xf32> to vector<16x16xbf16>
    %cst_28 = arith.constant dense<0.000000e+00> : vector<16x8xf32>
    %42 = tpu.matmul %41, %32, %cst_28 {dimension_numbers = #tpu.dot_dimension_numbers<[1], [0], [0], [1], [0, 0, 1, 1], [], []>} : vector<16x16xbf16>, vector<16x8xbf16>, vector<16x8xf32> -> vector<16x8xf32>
    %43 = vector.broadcast %40 : vector<16x1xf32> to vector<16x8xf32>
    %44 = arith.divf %42, %43 : vector<16x8xf32>
    %45 = arith.truncf %44 : vector<16x8xf32> to vector<16x8xbf16>
    %c1_29 = arith.constant 1 : index
    %c0_30 = arith.constant 0 : index
    %c0_31 = arith.constant 0 : index
    %46 = vector.load %arg5[%c1_29, %c0_30, %c0_31] : memref<4x8x32xbf16, #tpu.memory_space<vmem>>, vector<1x8x32xbf16>
    %47 = vector.shape_cast %46 : vector<1x8x32xbf16> to vector<8x32xbf16>
    %cst_32 = arith.constant dense<0.000000e+00> : vector<16x32xf32>
    %48 = tpu.matmul %45, %47, %cst_32 {dimension_numbers = #tpu.dot_dimension_numbers<[1], [0], [0], [1], [0, 0, 1, 1], [], []>} : vector<16x8xbf16>, vector<8x32xbf16>, vector<16x32xf32> -> vector<16x32xf32>
    %49 = arith.addf %26, %48 : vector<16x32xf32>
    %c2 = arith.constant 2 : index
    %c0_33 = arith.constant 0 : index
    %c0_34 = arith.constant 0 : index
    %50 = vector.load %arg2[%c2, %c0_33, %c0_34] : memref<4x16x8xbf16, #tpu.memory_space<vmem>>, vector<1x16x8xbf16>
    %51 = vector.shape_cast %50 : vector<1x16x8xbf16> to vector<16x8xbf16>
    %c2_35 = arith.constant 2 : index
    %c0_36 = arith.constant 0 : index
    %c0_37 = arith.constant 0 : index
    %52 = vector.load %arg3[%c2_35, %c0_36, %c0_37] : memref<4x16x8xbf16, #tpu.memory_space<vmem>>, vector<1x16x8xbf16>
    %53 = vector.shape_cast %52 : vector<1x16x8xbf16> to vector<16x8xbf16>
    %c2_38 = arith.constant 2 : index
    %c0_39 = arith.constant 0 : index
    %c0_40 = arith.constant 0 : index
    %54 = vector.load %arg4[%c2_38, %c0_39, %c0_40] : memref<4x16x8xbf16, #tpu.memory_space<vmem>>, vector<1x16x8xbf16>
    %55 = vector.shape_cast %54 : vector<1x16x8xbf16> to vector<16x8xbf16>
    %cst_41 = arith.constant dense<0.000000e+00> : vector<16x16xf32>
    %56 = tpu.matmul %51, %53, %cst_41 {dimension_numbers = #tpu.dot_dimension_numbers<[1], [1], [0], [0], [0, 0, 1, 0], [], []>} : vector<16x8xbf16>, vector<16x8xbf16>, vector<16x16xf32> -> vector<16x16xf32>
    %cst_42 = arith.constant dense<0xFF800000> : vector<16xf32>
    %57 = vector.multi_reduction <maximumf>, %56, %cst_42 [1] : vector<16x16xf32> to vector<16xf32>
    %58 = vector.shape_cast %57 : vector<16xf32> to vector<16x1xf32>
    %59 = vector.broadcast %58 : vector<16x1xf32> to vector<16x16xf32>
    %60 = arith.subf %56, %59 : vector<16x16xf32>
    %61 = math.exp %60 : vector<16x16xf32>
    %cst_43 = arith.constant dense<0.000000e+00> : vector<16xf32>
    %62 = vector.multi_reduction <add>, %61, %cst_43 [1] : vector<16x16xf32> to vector<16xf32>
    %63 = vector.shape_cast %62 : vector<16xf32> to vector<16x1xf32>
    %64 = arith.truncf %61 : vector<16x16xf32> to vector<16x16xbf16>
    %cst_44 = arith.constant dense<0.000000e+00> : vector<16x8xf32>
    %65 = tpu.matmul %64, %55, %cst_44 {dimension_numbers = #tpu.dot_dimension_numbers<[1], [0], [0], [1], [0, 0, 1, 1], [], []>} : vector<16x16xbf16>, vector<16x8xbf16>, vector<16x8xf32> -> vector<16x8xf32>
    %66 = vector.broadcast %63 : vector<16x1xf32> to vector<16x8xf32>
    %67 = arith.divf %65, %66 : vector<16x8xf32>
    %68 = arith.truncf %67 : vector<16x8xf32> to vector<16x8xbf16>
    %c2_45 = arith.constant 2 : index
    %c0_46 = arith.constant 0 : index
    %c0_47 = arith.constant 0 : index
    %69 = vector.load %arg5[%c2_45, %c0_46, %c0_47] : memref<4x8x32xbf16, #tpu.memory_space<vmem>>, vector<1x8x32xbf16>
    %70 = vector.shape_cast %69 : vector<1x8x32xbf16> to vector<8x32xbf16>
    %cst_48 = arith.constant dense<0.000000e+00> : vector<16x32xf32>
    %71 = tpu.matmul %68, %70, %cst_48 {dimension_numbers = #tpu.dot_dimension_numbers<[1], [0], [0], [1], [0, 0, 1, 1], [], []>} : vector<16x8xbf16>, vector<8x32xbf16>, vector<16x32xf32> -> vector<16x32xf32>
    %72 = arith.addf %49, %71 : vector<16x32xf32>
    %c3 = arith.constant 3 : index
    %c0_49 = arith.constant 0 : index
    %c0_50 = arith.constant 0 : index
    %73 = vector.load %arg2[%c3, %c0_49, %c0_50] : memref<4x16x8xbf16, #tpu.memory_space<vmem>>, vector<1x16x8xbf16>
    %74 = vector.shape_cast %73 : vector<1x16x8xbf16> to vector<16x8xbf16>
    %c3_51 = arith.constant 3 : index
    %c0_52 = arith.constant 0 : index
    %c0_53 = arith.constant 0 : index
    %75 = vector.load %arg3[%c3_51, %c0_52, %c0_53] : memref<4x16x8xbf16, #tpu.memory_space<vmem>>, vector<1x16x8xbf16>
    %76 = vector.shape_cast %75 : vector<1x16x8xbf16> to vector<16x8xbf16>
    %c3_54 = arith.constant 3 : index
    %c0_55 = arith.constant 0 : index
    %c0_56 = arith.constant 0 : index
    %77 = vector.load %arg4[%c3_54, %c0_55, %c0_56] : memref<4x16x8xbf16, #tpu.memory_space<vmem>>, vector<1x16x8xbf16>
    %78 = vector.shape_cast %77 : vector<1x16x8xbf16> to vector<16x8xbf16>
    %cst_57 = arith.constant dense<0.000000e+00> : vector<16x16xf32>
    %79 = tpu.matmul %74, %76, %cst_57 {dimension_numbers = #tpu.dot_dimension_numbers<[1], [1], [0], [0], [0, 0, 1, 0], [], []>} : vector<16x8xbf16>, vector<16x8xbf16>, vector<16x16xf32> -> vector<16x16xf32>
    %cst_58 = arith.constant dense<0xFF800000> : vector<16xf32>
    %80 = vector.multi_reduction <maximumf>, %79, %cst_58 [1] : vector<16x16xf32> to vector<16xf32>
    %81 = vector.shape_cast %80 : vector<16xf32> to vector<16x1xf32>
    %82 = vector.broadcast %81 : vector<16x1xf32> to vector<16x16xf32>
    %83 = arith.subf %79, %82 : vector<16x16xf32>
    %84 = math.exp %83 : vector<16x16xf32>
    %cst_59 = arith.constant dense<0.000000e+00> : vector<16xf32>
    %85 = vector.multi_reduction <add>, %84, %cst_59 [1] : vector<16x16xf32> to vector<16xf32>
    %86 = vector.shape_cast %85 : vector<16xf32> to vector<16x1xf32>
    %87 = arith.truncf %84 : vector<16x16xf32> to vector<16x16xbf16>
    %cst_60 = arith.constant dense<0.000000e+00> : vector<16x8xf32>
    %88 = tpu.matmul %87, %78, %cst_60 {dimension_numbers = #tpu.dot_dimension_numbers<[1], [0], [0], [1], [0, 0, 1, 1], [], []>} : vector<16x16xbf16>, vector<16x8xbf16>, vector<16x8xf32> -> vector<16x8xf32>
    %89 = vector.broadcast %86 : vector<16x1xf32> to vector<16x8xf32>
    %90 = arith.divf %88, %89 : vector<16x8xf32>
    %91 = arith.truncf %90 : vector<16x8xf32> to vector<16x8xbf16>
    %c3_61 = arith.constant 3 : index
    %c0_62 = arith.constant 0 : index
    %c0_63 = arith.constant 0 : index
    %92 = vector.load %arg5[%c3_61, %c0_62, %c0_63] : memref<4x8x32xbf16, #tpu.memory_space<vmem>>, vector<1x8x32xbf16>
    %93 = vector.shape_cast %92 : vector<1x8x32xbf16> to vector<8x32xbf16>
    %cst_64 = arith.constant dense<0.000000e+00> : vector<16x32xf32>
    %94 = tpu.matmul %91, %93, %cst_64 {dimension_numbers = #tpu.dot_dimension_numbers<[1], [0], [0], [1], [0, 0, 1, 1], [], []>} : vector<16x8xbf16>, vector<8x32xbf16>, vector<16x32xf32> -> vector<16x32xf32>
    %95 = arith.addf %72, %94 : vector<16x32xf32>
    %c0_65 = arith.constant 0 : index
    %c0_66 = arith.constant 0 : index
    %96 = vector.load %arg12[%c0_65, %c0_66] : memref<16x32xf32, #tpu.memory_space<vmem>>, vector<16x32xf32>
    %97 = arith.addf %96, %95 : vector<16x32xf32>
    %c0_67 = arith.constant 0 : index
    %c0_68 = arith.constant 0 : index
    %98 = vector.load %arg12[%c0_67, %c0_68] : memref<16x32xf32, #tpu.memory_space<vmem>>, vector<16x32xf32>
    tpu.vector_store %arg12[%c0_67, %c0_68], %97 {strides = array<i32>} : memref<16x32xf32, #tpu.memory_space<vmem>>, vector<16x32xf32>,
    %c0_i32_69 = arith.constant 0 : i32
    %99 = arith.cmpi eq, %arg1, %c0_i32_69 : i32
    %100 = arith.extui %99 : i1 to i32
    %c0_i32_70 = arith.constant 0 : i32
    %101 = arith.cmpi ne, %100, %c0_i32_70 : i32
    scf.if %101 {
      %c0_71 = arith.constant 0 : index
      %c0_72 = arith.constant 0 : index
      %102 = vector.load %arg12[%c0_71, %c0_72] : memref<16x32xf32, #tpu.memory_space<vmem>>, vector<16x32xf32>
      %c0_73 = arith.constant 0 : index
      %c0_74 = arith.constant 0 : index
      %103 = vector.load %arg6[%c0_73, %c0_74] : memref<1x32xbf16, #tpu.memory_space<vmem>>, vector<1x32xbf16>
      %104 = arith.extf %103 : vector<1x32xbf16> to vector<1x32xf32>
      %105 = vector.broadcast %104 : vector<1x32xf32> to vector<16x32xf32>
      %106 = arith.addf %102, %105 : vector<16x32xf32>
      %cst_75 = arith.constant dense<0.000000e+00> : vector<16xf32>
      %107 = vector.multi_reduction <add>, %106, %cst_75 [1] : vector<16x32xf32> to vector<16xf32>
      %108 = vector.shape_cast %107 : vector<16xf32> to vector<16x1xf32>
      %cst_76 = arith.constant 3.200000e+01 : f32
      %109 = vector.broadcast %cst_76 : f32 to vector<16x1xf32>
      %110 = arith.divf %108, %109 : vector<16x1xf32>
      %111 = vector.broadcast %110 : vector<16x1xf32> to vector<16x32xf32>
      %112 = arith.subf %106, %111 : vector<16x32xf32>
      %113 = arith.mulf %112, %112 : vector<16x32xf32>
      %cst_77 = arith.constant dense<0.000000e+00> : vector<16xf32>
      %114 = vector.multi_reduction <add>, %113, %cst_77 [1] : vector<16x32xf32> to vector<16xf32>
      %115 = vector.shape_cast %114 : vector<16xf32> to vector<16x1xf32>
      %cst_78 = arith.constant 3.200000e+01 : f32
      %116 = vector.broadcast %cst_78 : f32 to vector<16x1xf32>
      %117 = arith.divf %115, %116 : vector<16x1xf32>
      %118 = vector.broadcast %110 : vector<16x1xf32> to vector<16x32xf32>
      %119 = arith.subf %106, %118 : vector<16x32xf32>
      %cst_79 = arith.constant 9.99999997E-7 : f32
      %120 = vector.broadcast %cst_79 : f32 to vector<16x1xf32>
      %121 = arith.addf %117, %120 : vector<16x1xf32>
      %122 = math.rsqrt %121 : vector<16x1xf32>
      %123 = vector.broadcast %122 : vector<16x1xf32> to vector<16x32xf32>
      %124 = arith.mulf %119, %123 : vector<16x32xf32>
      %c0_80 = arith.constant 0 : index
      %c0_81 = arith.constant 0 : index
      %125 = vector.load %arg7[%c0_80, %c0_81] : memref<1x32xbf16, #tpu.memory_space<vmem>>, vector<1x32xbf16>
      %126 = arith.extf %125 : vector<1x32xbf16> to vector<1x32xf32>
      %127 = vector.broadcast %126 : vector<1x32xf32> to vector<16x32xf32>
      %128 = arith.mulf %124, %127 : vector<16x32xf32>
      %c0_82 = arith.constant 0 : index
      %c0_83 = arith.constant 0 : index
      %129 = vector.load %arg8[%c0_82, %c0_83] : memref<1x32xbf16, #tpu.memory_space<vmem>>, vector<1x32xbf16>
      %130 = arith.extf %129 : vector<1x32xbf16> to vector<1x32xf32>
      %131 = vector.broadcast %130 : vector<1x32xf32> to vector<16x32xf32>
      %132 = arith.addf %128, %131 : vector<16x32xf32>
      %c0_84 = arith.constant 0 : index
      %c0_85 = arith.constant 0 : index
      %c0_86 = arith.constant 0 : index
      %133 = vector.load %arg9[%c0_84, %c0_85, %c0_86] : memref<1x16x32xbf16, #tpu.memory_space<vmem>>, vector<1x16x32xbf16>
      %134 = vector.shape_cast %133 : vector<1x16x32xbf16> to vector<16x32xbf16>
      %135 = arith.extf %134 : vector<16x32xbf16> to vector<16x32xf32>
      %136 = arith.addf %132, %135 : vector<16x32xf32>
      %137 = arith.truncf %136 : vector<16x32xf32> to vector<16x32xbf16>
      %c0_87 = arith.constant 0 : index
      %c0_88 = arith.constant 0 : index
      %c0_89 = arith.constant 0 : index
      %138 = vector.load %arg10[%c0_87, %c0_88, %c0_89] : memref<1x16x32xbf16, #tpu.memory_space<vmem>>, vector<1x16x32xbf16>
      %139 = vector.shape_cast %138 : vector<1x16x32xbf16> to vector<16x32xbf16>
      %140 = vector.shape_cast %137 : vector<16x32xbf16> to vector<1x16x32xbf16>
      tpu.vector_store %arg10[%c0_87, %c0_88, %c0_89], %140 {strides = array<i32>} : memref<1x16x32xbf16, #tpu.memory_space<vmem>>, vector<1x16x32xbf16>,
      %cst_90 = arith.constant 5.000000e-01 : f32
      %141 = vector.broadcast %cst_90 : f32 to vector<16x32xf32>
      %142 = arith.mulf %141, %136 : vector<16x32xf32>
      %cst_91 = arith.constant 4.471500e-02 : f32
      %143 = vector.broadcast %cst_91 : f32 to vector<16x32xf32>
      %144 = arith.mulf %143, %136 : vector<16x32xf32>
      %145 = arith.mulf %144, %136 : vector<16x32xf32>
      %146 = arith.mulf %145, %136 : vector<16x32xf32>
      %147 = arith.addf %136, %146 : vector<16x32xf32>
      %cst_92 = arith.constant 0.797884583 : f32
      %148 = vector.broadcast %cst_92 : f32 to vector<16x32xf32>
      %149 = arith.mulf %148, %147 : vector<16x32xf32>
      %150 = math.tanh %149 : vector<16x32xf32>
      %cst_93 = arith.constant 1.000000e+00 : f32
      %151 = vector.broadcast %cst_93 : f32 to vector<16x32xf32>
      %152 = arith.addf %151, %150 : vector<16x32xf32>
      %153 = arith.mulf %142, %152 : vector<16x32xf32>
      %154 = arith.truncf %153 : vector<16x32xf32> to vector<16x32xbf16>
      %c0_94 = arith.constant 0 : index
      %c0_95 = arith.constant 0 : index
      %c0_96 = arith.constant 0 : index
      %155 = vector.load %arg11[%c0_94, %c0_95, %c0_96] : memref<1x16x32xbf16, #tpu.memory_space<vmem>>, vector<1x16x32xbf16>
      %156 = vector.shape_cast %155 : vector<1x16x32xbf16> to vector<16x32xbf16>
      %157 = vector.shape_cast %154 : vector<16x32xbf16> to vector<1x16x32xbf16>
      tpu.vector_store %arg11[%c0_94, %c0_95, %c0_96], %157 {strides = array<i32>} : memref<1x16x32xbf16, #tpu.memory_space<vmem>>, vector<1x16x32xbf16>,
    } else {
    }
    return
  }
  func.func @transform_0(%arg0: i32, %arg1: i32) -> (i32, i32, i32) {
    %c1_i32 = arith.constant 1 : i32
    %0 = arith.muli %arg0, %c1_i32 : i32
    %1 = arith.addi %0, %arg1 : i32
    %c0_i32 = arith.constant 0 : i32
    %c0_i32_0 = arith.constant 0 : i32
    %c0_i32_1 = arith.constant 0 : i32
    return %1, %c0_i32, %c0_i32_0 : i32, i32, i32
  }
  func.func @transform_1(%arg0: i32, %arg1: i32) -> (i32, i32, i32) {
    %c1_i32 = arith.constant 1 : i32
    %0 = arith.muli %arg0, %c1_i32 : i32
    %1 = arith.addi %0, %arg1 : i32
    %c0_i32 = arith.constant 0 : i32
    %c0_i32_0 = arith.constant 0 : i32
    %c0_i32_1 = arith.constant 0 : i32
    return %1, %c0_i32, %c0_i32_0 : i32, i32, i32
  }
  func.func @transform_2(%arg0: i32, %arg1: i32) -> (i32, i32, i32) {
    %c1_i32 = arith.constant 1 : i32
    %0 = arith.muli %arg0, %c1_i32 : i32
    %1 = arith.addi %0, %arg1 : i32
    %c0_i32 = arith.constant 0 : i32
    %c0_i32_0 = arith.constant 0 : i32
    %c0_i32_1 = arith.constant 0 : i32
    return %1, %c0_i32, %c0_i32_0 : i32, i32, i32
  }
  func.func @transform_3(%arg0: i32, %arg1: i32) -> (i32, i32, i32) {
    %c0_i32 = arith.constant 0 : i32
    %c0_i32_0 = arith.constant 0 : i32
    %c0_i32_1 = arith.constant 0 : i32
    return %arg1, %c0_i32, %c0_i32_0 : i32, i32, i32
  }
  func.func @transform_4(%arg0: i32, %arg1: i32) -> (i32, i32) {
    %c0_i32 = arith.constant 0 : i32
    %c0_i32_0 = arith.constant 0 : i32
    %c0_i32_1 = arith.constant 0 : i32
    return %c0_i32, %c0_i32_0 : i32, i32
  }
  func.func @transform_5(%arg0: i32, %arg1: i32) -> (i32, i32) {
    %c0_i32 = arith.constant 0 : i32
    %c0_i32_0 = arith.constant 0 : i32
    %c0_i32_1 = arith.constant 0 : i32
    return %c0_i32, %c0_i32_0 : i32, i32
  }
  func.func @transform_6(%arg0: i32, %arg1: i32) -> (i32, i32) {
    %c0_i32 = arith.constant 0 : i32
    %c0_i32_0 = arith.constant 0 : i32
    %c0_i32_1 = arith.constant 0 : i32
    return %c0_i32, %c0_i32_0 : i32, i32
  }
  func.func @transform_7(%arg0: i32, %arg1: i32) -> (i32, i32, i32) {
    %c0_i32 = arith.constant 0 : i32
    %c0_i32_0 = arith.constant 0 : i32
    %c0_i32_1 = arith.constant 0 : i32
    return %arg0, %c0_i32, %c0_i32_0 : i32, i32, i32
  }
  func.func @transform_8(%arg0: i32, %arg1: i32) -> (i32, i32, i32) {
    %c0_i32 = arith.constant 0 : i32
    %c0_i32_0 = arith.constant 0 : i32
    %c0_i32_1 = arith.constant 0 : i32
    return %arg0, %c0_i32, %c0_i32_0 : i32, i32, i32
  }
  func.func @transform_9(%arg0: i32, %arg1: i32) -> (i32, i32, i32) {
    %c0_i32 = arith.constant 0 : i32
    %c0_i32_0 = arith.constant 0 : i32
    %c0_i32_1 = arith.constant 0 : i32
    return %arg0, %c0_i32, %c0_i32_0 : i32, i32, i32
  }
}

module attributes {stable_mosaic.version = 11 : i64} {
  func.func @_ln_kernel(%arg0: i32, %arg1: memref<32x32xbf16, #tpu.memory_space<vmem>>, %arg2: memref<1x32xbf16, #tpu.memory_space<vmem>>, %arg3: memref<1x32xbf16, #tpu.memory_space<vmem>>, %arg4: memref<32x32xbf16, #tpu.memory_space<vmem>>) attributes {dimension_semantics = [#tpu.dimension_semantics<parallel>], iteration_bounds = array<i64: 1>, scalar_prefetch = 0 : i64, scratch_operands = 0 : i64, tpu.core_type = #tpu.core_type<tc>, window_params = [{transform_indices = @transform_0, window_bounds = array<i64: 32, 32>}, {pipeline_mode = #tpu.pipeline_mode<synchronous>, transform_indices = @transform_1, window_bounds = array<i64: 1, 32>}, {pipeline_mode = #tpu.pipeline_mode<synchronous>, transform_indices = @transform_2, window_bounds = array<i64: 1, 32>}, {transform_indices = @transform_3, window_bounds = array<i64: 32, 32>}]} {
    %c0 = arith.constant 0 : index
    %c0_0 = arith.constant 0 : index
    %0 = vector.load %arg1[%c0, %c0_0] : memref<32x32xbf16, #tpu.memory_space<vmem>>, vector<32x32xbf16>
    %1 = arith.extf %0 : vector<32x32xbf16> to vector<32x32xf32>
    %cst = arith.constant dense<0.000000e+00> : vector<32xf32>
    %2 = vector.multi_reduction <add>, %1, %cst [1] : vector<32x32xf32> to vector<32xf32>
    %3 = vector.shape_cast %2 : vector<32xf32> to vector<32x1xf32>
    %cst_1 = arith.constant 3.200000e+01 : f32
    %4 = vector.broadcast %cst_1 : f32 to vector<32x1xf32>
    %5 = arith.divf %3, %4 : vector<32x1xf32>
    %6 = vector.broadcast %5 : vector<32x1xf32> to vector<32x32xf32>
    %7 = arith.subf %1, %6 : vector<32x32xf32>
    %8 = arith.mulf %7, %7 : vector<32x32xf32>
    %cst_2 = arith.constant dense<0.000000e+00> : vector<32xf32>
    %9 = vector.multi_reduction <add>, %8, %cst_2 [1] : vector<32x32xf32> to vector<32xf32>
    %10 = vector.shape_cast %9 : vector<32xf32> to vector<32x1xf32>
    %cst_3 = arith.constant 3.200000e+01 : f32
    %11 = vector.broadcast %cst_3 : f32 to vector<32x1xf32>
    %12 = arith.divf %10, %11 : vector<32x1xf32>
    %13 = vector.broadcast %5 : vector<32x1xf32> to vector<32x32xf32>
    %14 = arith.subf %1, %13 : vector<32x32xf32>
    %cst_4 = arith.constant 9.99999997E-7 : f32
    %15 = vector.broadcast %cst_4 : f32 to vector<32x1xf32>
    %16 = arith.addf %12, %15 : vector<32x1xf32>
    %17 = math.rsqrt %16 : vector<32x1xf32>
    %18 = vector.broadcast %17 : vector<32x1xf32> to vector<32x32xf32>
    %19 = arith.mulf %14, %18 : vector<32x32xf32>
    %c0_5 = arith.constant 0 : index
    %c0_6 = arith.constant 0 : index
    %20 = vector.load %arg2[%c0_5, %c0_6] : memref<1x32xbf16, #tpu.memory_space<vmem>>, vector<1x32xbf16>
    %21 = arith.extf %20 : vector<1x32xbf16> to vector<1x32xf32>
    %22 = vector.broadcast %21 : vector<1x32xf32> to vector<32x32xf32>
    %23 = arith.mulf %19, %22 : vector<32x32xf32>
    %c0_7 = arith.constant 0 : index
    %c0_8 = arith.constant 0 : index
    %24 = vector.load %arg3[%c0_7, %c0_8] : memref<1x32xbf16, #tpu.memory_space<vmem>>, vector<1x32xbf16>
    %25 = arith.extf %24 : vector<1x32xbf16> to vector<1x32xf32>
    %26 = vector.broadcast %25 : vector<1x32xf32> to vector<32x32xf32>
    %27 = arith.addf %23, %26 : vector<32x32xf32>
    %28 = arith.truncf %27 : vector<32x32xf32> to vector<32x32xbf16>
    %c0_9 = arith.constant 0 : index
    %c0_10 = arith.constant 0 : index
    %29 = vector.load %arg4[%c0_9, %c0_10] : memref<32x32xbf16, #tpu.memory_space<vmem>>, vector<32x32xbf16>
    tpu.vector_store %arg4[%c0_9, %c0_10], %28 {strides = array<i32>} : memref<32x32xbf16, #tpu.memory_space<vmem>>, vector<32x32xbf16>,
    return
  }
  func.func @transform_0(%arg0: i32) -> (i32, i32) {
    %c0_i32 = arith.constant 0 : i32
    %c0_i32_0 = arith.constant 0 : i32
    return %arg0, %c0_i32 : i32, i32
  }
  func.func @transform_1(%arg0: i32) -> (i32, i32) {
    %c0_i32 = arith.constant 0 : i32
    %c0_i32_0 = arith.constant 0 : i32
    %c0_i32_1 = arith.constant 0 : i32
    return %c0_i32, %c0_i32_0 : i32, i32
  }
  func.func @transform_2(%arg0: i32) -> (i32, i32) {
    %c0_i32 = arith.constant 0 : i32
    %c0_i32_0 = arith.constant 0 : i32
    %c0_i32_1 = arith.constant 0 : i32
    return %c0_i32, %c0_i32_0 : i32, i32
  }
  func.func @transform_3(%arg0: i32) -> (i32, i32) {
    %c0_i32 = arith.constant 0 : i32
    %c0_i32_0 = arith.constant 0 : i32
    return %arg0, %c0_i32 : i32, i32
  }
}

module attributes {stable_mosaic.version = 11 : i64} {
  func.func @_linear_ln_res_kernel(%arg0: i32, %arg1: i32, %arg2: memref<32x64xbf16, #tpu.memory_space<vmem>>, %arg3: memref<64x32xbf16, #tpu.memory_space<vmem>>, %arg4: memref<1x32xbf16, #tpu.memory_space<vmem>>, %arg5: memref<1x32xbf16, #tpu.memory_space<vmem>>, %arg6: memref<1x32xbf16, #tpu.memory_space<vmem>>, %arg7: memref<32x32xbf16, #tpu.memory_space<vmem>>, %arg8: memref<32x32xbf16, #tpu.memory_space<vmem>>, %arg9: memref<32x32xf32, #tpu.memory_space<vmem>>) attributes {dimension_semantics = [#tpu.dimension_semantics<parallel>, #tpu.dimension_semantics<arbitrary>], iteration_bounds = array<i64: 1, 1>, scalar_prefetch = 0 : i64, scratch_operands = 1 : i64, tpu.core_type = #tpu.core_type<tc>, window_params = [{transform_indices = @transform_0, window_bounds = array<i64: 32, 64>}, {transform_indices = @transform_1, window_bounds = array<i64: 64, 32>}, {pipeline_mode = #tpu.pipeline_mode<synchronous>, transform_indices = @transform_2, window_bounds = array<i64: 1, 32>}, {pipeline_mode = #tpu.pipeline_mode<synchronous>, transform_indices = @transform_3, window_bounds = array<i64: 1, 32>}, {pipeline_mode = #tpu.pipeline_mode<synchronous>, transform_indices = @transform_4, window_bounds = array<i64: 1, 32>}, {transform_indices = @transform_5, window_bounds = array<i64: 32, 32>}, {transform_indices = @transform_6, window_bounds = array<i64: 32, 32>}]} {
    %c0_i32 = arith.constant 0 : i32
    %0 = arith.cmpi eq, %arg1, %c0_i32 : i32
    %1 = arith.extui %0 : i1 to i32
    %c0_i32_0 = arith.constant 0 : i32
    %2 = arith.cmpi ne, %1, %c0_i32_0 : i32
    scf.if %2 {
      %cst_10 = arith.constant 0.000000e+00 : f32
      %12 = vector.broadcast %cst_10 : f32 to vector<32x32xf32>
      %c0_11 = arith.constant 0 : index
      %c0_12 = arith.constant 0 : index
      %13 = vector.load %arg9[%c0_11, %c0_12] : memref<32x32xf32, #tpu.memory_space<vmem>>, vector<32x32xf32>
      tpu.vector_store %arg9[%c0_11, %c0_12], %12 {strides = array<i32>} : memref<32x32xf32, #tpu.memory_space<vmem>>, vector<32x32xf32>,
    } else {
    }
    %c0 = arith.constant 0 : index
    %c0_1 = arith.constant 0 : index
    %3 = vector.load %arg9[%c0, %c0_1] : memref<32x32xf32, #tpu.memory_space<vmem>>, vector<32x32xf32>
    %c0_2 = arith.constant 0 : index
    %c0_3 = arith.constant 0 : index
    %4 = vector.load %arg2[%c0_2, %c0_3] : memref<32x64xbf16, #tpu.memory_space<vmem>>, vector<32x64xbf16>
    %c0_4 = arith.constant 0 : index
    %c0_5 = arith.constant 0 : index
    %5 = vector.load %arg3[%c0_4, %c0_5] : memref<64x32xbf16, #tpu.memory_space<vmem>>, vector<64x32xbf16>
    %cst = arith.constant dense<0.000000e+00> : vector<32x32xf32>
    %6 = tpu.matmul %4, %5, %cst {dimension_numbers = #tpu.dot_dimension_numbers<[1], [0], [0], [1], [0, 0, 1, 1], [], []>} : vector<32x64xbf16>, vector<64x32xbf16>, vector<32x32xf32> -> vector<32x32xf32>
    %7 = arith.addf %3, %6 : vector<32x32xf32>
    %c0_6 = arith.constant 0 : index
    %c0_7 = arith.constant 0 : index
    %8 = vector.load %arg9[%c0_6, %c0_7] : memref<32x32xf32, #tpu.memory_space<vmem>>, vector<32x32xf32>
    tpu.vector_store %arg9[%c0_6, %c0_7], %7 {strides = array<i32>} : memref<32x32xf32, #tpu.memory_space<vmem>>, vector<32x32xf32>,
    %c0_i32_8 = arith.constant 0 : i32
    %9 = arith.cmpi eq, %arg1, %c0_i32_8 : i32
    %10 = arith.extui %9 : i1 to i32
    %c0_i32_9 = arith.constant 0 : i32
    %11 = arith.cmpi ne, %10, %c0_i32_9 : i32
    scf.if %11 {
      %c0_10 = arith.constant 0 : index
      %c0_11 = arith.constant 0 : index
      %12 = vector.load %arg9[%c0_10, %c0_11] : memref<32x32xf32, #tpu.memory_space<vmem>>, vector<32x32xf32>
      %c0_12 = arith.constant 0 : index
      %c0_13 = arith.constant 0 : index
      %13 = vector.load %arg4[%c0_12, %c0_13] : memref<1x32xbf16, #tpu.memory_space<vmem>>, vector<1x32xbf16>
      %14 = arith.extf %13 : vector<1x32xbf16> to vector<1x32xf32>
      %15 = vector.broadcast %14 : vector<1x32xf32> to vector<32x32xf32>
      %16 = arith.addf %12, %15 : vector<32x32xf32>
      %cst_14 = arith.constant dense<0.000000e+00> : vector<32xf32>
      %17 = vector.multi_reduction <add>, %16, %cst_14 [1] : vector<32x32xf32> to vector<32xf32>
      %18 = vector.shape_cast %17 : vector<32xf32> to vector<32x1xf32>
      %cst_15 = arith.constant 3.200000e+01 : f32
      %19 = vector.broadcast %cst_15 : f32 to vector<32x1xf32>
      %20 = arith.divf %18, %19 : vector<32x1xf32>
      %21 = vector.broadcast %20 : vector<32x1xf32> to vector<32x32xf32>
      %22 = arith.subf %16, %21 : vector<32x32xf32>
      %23 = arith.mulf %22, %22 : vector<32x32xf32>
      %cst_16 = arith.constant dense<0.000000e+00> : vector<32xf32>
      %24 = vector.multi_reduction <add>, %23, %cst_16 [1] : vector<32x32xf32> to vector<32xf32>
      %25 = vector.shape_cast %24 : vector<32xf32> to vector<32x1xf32>
      %cst_17 = arith.constant 3.200000e+01 : f32
      %26 = vector.broadcast %cst_17 : f32 to vector<32x1xf32>
      %27 = arith.divf %25, %26 : vector<32x1xf32>
      %28 = vector.broadcast %20 : vector<32x1xf32> to vector<32x32xf32>
      %29 = arith.subf %16, %28 : vector<32x32xf32>
      %cst_18 = arith.constant 9.99999997E-7 : f32
      %30 = vector.broadcast %cst_18 : f32 to vector<32x1xf32>
      %31 = arith.addf %27, %30 : vector<32x1xf32>
      %32 = math.rsqrt %31 : vector<32x1xf32>
      %33 = vector.broadcast %32 : vector<32x1xf32> to vector<32x32xf32>
      %34 = arith.mulf %29, %33 : vector<32x32xf32>
      %c0_19 = arith.constant 0 : index
      %c0_20 = arith.constant 0 : index
      %35 = vector.load %arg5[%c0_19, %c0_20] : memref<1x32xbf16, #tpu.memory_space<vmem>>, vector<1x32xbf16>
      %36 = arith.extf %35 : vector<1x32xbf16> to vector<1x32xf32>
      %37 = vector.broadcast %36 : vector<1x32xf32> to vector<32x32xf32>
      %38 = arith.mulf %34, %37 : vector<32x32xf32>
      %c0_21 = arith.constant 0 : index
      %c0_22 = arith.constant 0 : index
      %39 = vector.load %arg6[%c0_21, %c0_22] : memref<1x32xbf16, #tpu.memory_space<vmem>>, vector<1x32xbf16>
      %40 = arith.extf %39 : vector<1x32xbf16> to vector<1x32xf32>
      %41 = vector.broadcast %40 : vector<1x32xf32> to vector<32x32xf32>
      %42 = arith.addf %38, %41 : vector<32x32xf32>
      %c0_23 = arith.constant 0 : index
      %c0_24 = arith.constant 0 : index
      %43 = vector.load %arg7[%c0_23, %c0_24] : memref<32x32xbf16, #tpu.memory_space<vmem>>, vector<32x32xbf16>
      %44 = arith.extf %43 : vector<32x32xbf16> to vector<32x32xf32>
      %45 = arith.addf %42, %44 : vector<32x32xf32>
      %46 = arith.truncf %45 : vector<32x32xf32> to vector<32x32xbf16>
      %c0_25 = arith.constant 0 : index
      %c0_26 = arith.constant 0 : index
      %47 = vector.load %arg8[%c0_25, %c0_26] : memref<32x32xbf16, #tpu.memory_space<vmem>>, vector<32x32xbf16>
      tpu.vector_store %arg8[%c0_25, %c0_26], %46 {strides = array<i32>} : memref<32x32xbf16, #tpu.memory_space<vmem>>, vector<32x32xbf16>,
    } else {
    }
    return
  }
  func.func @transform_0(%arg0: i32, %arg1: i32) -> (i32, i32) {
    %c0_i32 = arith.constant 0 : i32
    return %arg0, %arg1 : i32, i32
  }
  func.func @transform_1(%arg0: i32, %arg1: i32) -> (i32, i32) {
    %c0_i32 = arith.constant 0 : i32
    %c0_i32_0 = arith.constant 0 : i32
    return %arg1, %c0_i32 : i32, i32
  }
  func.func @transform_2(%arg0: i32, %arg1: i32) -> (i32, i32) {
    %c0_i32 = arith.constant 0 : i32
    %c0_i32_0 = arith.constant 0 : i32
    %c0_i32_1 = arith.constant 0 : i32
    return %c0_i32, %c0_i32_0 : i32, i32
  }
  func.func @transform_3(%arg0: i32, %arg1: i32) -> (i32, i32) {
    %c0_i32 = arith.constant 0 : i32
    %c0_i32_0 = arith.constant 0 : i32
    %c0_i32_1 = arith.constant 0 : i32
    return %c0_i32, %c0_i32_0 : i32, i32
  }
  func.func @transform_4(%arg0: i32, %arg1: i32) -> (i32, i32) {
    %c0_i32 = arith.constant 0 : i32
    %c0_i32_0 = arith.constant 0 : i32
    %c0_i32_1 = arith.constant 0 : i32
    return %c0_i32, %c0_i32_0 : i32, i32
  }
  func.func @transform_5(%arg0: i32, %arg1: i32) -> (i32, i32) {
    %c0_i32 = arith.constant 0 : i32
    %c0_i32_0 = arith.constant 0 : i32
    return %arg0, %c0_i32 : i32, i32
  }
  func.func @transform_6(%arg0: i32, %arg1: i32) -> (i32, i32) {
    %c0_i32 = arith.constant 0 : i32
    %c0_i32_0 = arith.constant 0 : i32
    return %arg0, %c0_i32 : i32, i32
  }
}

</mosaic_0001>

<bundles_post_ra>
// kernel: siglip_vision_transformer.6
= control target key start
LH: loop header
LB: loop body
LE: loop exit
PB: predicated region body
PF: predicated region fallthrough
CT: control target
= control target key end

     0   :  { %s442_s15 = smov 0   ;;  %s474_s0 = inlined_call_operand.vmem [shape: bf16[2,16,48], index: 0, kind: input, shape index: {}]   ;;  %s475_s1 = inlined_call_operand.vmem [shape: bf16[48,32], index: 1, kind: input, shape index: {}]   ;;  %s476_s2 = inlined_call_operand.vmem [shape: bf16[1,32], index: 2, kind: input, shape index: {}]   ;;  %s477_s3 = inlined_call_operand.vmem [shape: bf16[16,32], index: 3, kind: input, shape index: {}]   ;;  %s478_s4 = inlined_call_operand.vmem [shape: bf16[2,16,32], index: 4, kind: output, shape index: {}]  }
   0x1 LB: > { %s353_s16 = sadd.s32 4294967295, %s413_s15   ;;  %p357_p0 = scmp.ge.s32.totalorder %s413_s15, 1  ;;  %s413_s15 = sphi %s442_s15, %s14_s15  }
   0x2   : > { %p162_p1 = scmp.lt.s32.totalorder %s413_s15, 3 }
   0x4   : > { %p163_p2 = pnand %p357_p0, %p162_p1 }
   0x5   : > { %v403_v0 = vld [vmem:[%s475_s1] sm:$0xff] (!%p163_p2)   ;;  %v415_v1 = vmov (!%p163_p2), 0.0   ;;  %v404_v2 = vld [vmem:[%s475_s1 + $0x8] sm:$0xff] (!%p163_p2)   ;;  %vm416_vm0 = vmmov (!%p163_p2), 0   ;;  %p188_p3 = scmp.lt.s32.totalorder (!%p163_p2), %s353_s16, 1  ;;  %v405_v3 = vld [vmem:[%s475_s1 + $0x10] sm:$0xff] (!%p163_p2)   ;;  %v209_v5 = vlaneseq (!%p163_p2) }
   0x6   : > { %166 = sbr.rel (%p163_p2) target bundleno = 239 (0xef), region = 36  ;;  %383 = vmatprep.subr.bf16.mxu0 (!%p163_p2), %v415_v1  ;;  %389 = vmatprep.mubr.msk.bf16.mxu0 (!%p163_p2), %vm416_vm0, %v415_v1  ;;  %vm236_vm1 = vcmask (!%p163_p2), 392192   ;;  %v207_v7 = vld [vmem:[%s476_s2] sm:$0x1] (!%p163_p2)  ;;  %vm295_vm2 = vcmask (!%p163_p2), 257024  }
   0x7   : > { %384 = vmatpush3.bf16.msra.mxu0 (!%p163_p2), %v403_v0  ;;  %v210_v6 = vshrl.u32 (!%p163_p2), %v209_v5, 7  ;;  %v208_v8 = vunpack.c.l.bf16 (!%p163_p2), %v207_v7  ;;  %v376_v10 = vld [vmem:[%s477_s3] sm:$0xff] (!%p163_p2)  }
   0x8   : > { %385 = vmatprep.subr.bf16.mxu0 (!%p163_p2), %v415_v1  ;;  %v377_v12 = vunpack.c.l.bf16 (!%p163_p2), %v376_v10  ;;  %v378_v16 = vunpack.c.h.bf16 (!%p163_p2), %v376_v10 }
   0x9   : > { %v211_v9 = vsub.s32 (!%p163_p2), 0, %v210_v6 }
   0xb   : > { %386 = vmatpush3.bf16.msra.mxu0 (!%p163_p2), %v404_v2  ;;  %v212_v11 = vrot.slane (!%p163_p2), %v208_v8, %v211_v9 }
   0xc   : > { %387 = vmatprep.subr.bf16.mxu0 (!%p163_p2), %v415_v1 }
   0xd   : > { %s480_s16 = smov (!%p188_p3, %s353_s16), 1 }
   0xe   : > { %s371_s23 = sshll.u32 %s480_s16, 3 }
   0xf   : > { %s192_s26 = scalar_lea.vmem %s474_s0, %s371_s23  ;;  %388 = vmatpush3.bf16.msra.mxu0 %v405_v3  ;;  %s197_s7 = scalar_lea.vmem %s478_s4, %s371_s23 }
  0x10   : > { %v406_v4 = vld [vmem:[%s192_s26] sm:$0xff]  }
  0x12   : > { %390 = vmatmul.mubr.msk.bf16.vlgmr.msra.gmra.mrb[0].mxu0 %vm236_vm1, %v406_v4 }
  0xe5   : > { %v274_v13 = vpop.f32.mrb[0].mxu0 }
  0xe6   : > { %v275_v14 = vadd.f32 %v274_v13, %v212_v11  ;;  %v391_v15 = vpop.f32.mrb[1].mxu0 }
  0xe7   : > { %v277_v17 = vpop.f32.mrb[2].mxu0 }
  0xe8   : > { %v285_v18 = vadd.f32 %v377_v12, %v275_v14  ;;  %v278_v19 = vadd.f32 %v277_v17, %v212_v11  ;;  %v392_v20 = vpop.f32.mrb[3].mxu0 }
  0xea   : > { %v373_v21 = vpack.c.bf16 %v285_v18, %v285_v18  ;;  %v286_v22 = vadd.f32 %v378_v16, %v278_v19 }
  0xec   : > { %296 = vst.msk [vmem:[%s197_s7] sm:$0xf] %vm295_vm2, %v373_v21  ;;  %v374_v23 = vpack.c.bf16 %v286_v22, %v286_v22 }
  0xee   : > { %297 = vst.msk [vmem:[%s197_s7 + $0x4] sm:$0xf] %vm295_vm2, %v374_v23 }
  0xef PF: > { %s14_s15 = sadd.s32 1, %s413_s15  }
  0xf0   : > { %p11_p4 = scmp.ge.s32.totalorder %s14_s15, 4  }
  0xf2   :  { %13 = sbr.rel (!%p11_p4) target bundleno = 1 (0x1), region = 66 }

// kernel: siglip_vision_transformer.9
= control target key start
LH: loop header
LB: loop body
LE: loop exit
PB: predicated region body
PF: predicated region fallthrough
CT: control target
= control target key end

     0   :  { %vm51_vm0 = vcmask 261120   ;;  %v25_v4 = vlaneseq  ;;  %vm123_vm1 = vcmask 519168   ;;  %s209_s1 = inlined_call_operand.vmem [shape: bf16[32,64], index: 1, kind: input, shape index: {}]   ;;  %s210_s0 = inlined_call_operand.vmem [shape: bf16[32,32], index: 0, kind: input, shape index: {}]   ;;  %s211_s2 = inlined_call_operand.vmem [shape: bf16[1,64], index: 2, kind: input, shape index: {}]   ;;  %s212_s3 = inlined_call_operand.vmem [shape: bf16[32,64], index: 3, kind: output, shape index: {}]  }
   0x1   :  { %v158_v0 = vld [vmem:[%s209_s1] sm:$0xff]   ;;  %v159_v1 = vld [vmem:[%s209_s1 + $0x8] sm:$0xff]  }
   0x2   :  { %150 = vmatprep.subr.bf16.mxu0 %v158_v0  ;;  %v160_v2 = vld [vmem:[%s210_s0] sm:$0xff]   ;;  %v161_v3 = vld [vmem:[%s210_s0 + $0x8] sm:$0xff]   ;;  %v26_v5 = vshrl.u32 %v25_v4, 7 }
   0x3   :  { %151 = vmatpush3.bf16.msra.mxu0 %v158_v0  ;;  %154 = vmatprep.mubr.msk.bf16.mxu0 %vm51_vm0, %v160_v2  ;;  %v23_v6 = vld [vmem:[%s211_s2] sm:$0x1] }
   0x4   :  { %152 = vmatprep.subr.bf16.mxu0 %v159_v1  ;;  %v24_v7 = vunpack.c.l.bf16 %v23_v6  ;;  %v27_v8 = vsub.s32 0, %v26_v5 }
   0x6   :  { %v28_v9 = vrot.slane %v24_v7, %v27_v8 }
   0x7   :  { %153 = vmatpush3.bf16.msra.mxu0 %v159_v1 }
   0xa   :  { %155 = vmatmul.mubr.msk.bf16.vlgmr.msra.gmra.mrb[0].mxu0 %vm51_vm0, %v161_v3 }
  0xdd   :  { %v156_v10 = vpop.f32.mrb[0].mxu0 }
  0xde   :  { %v101_v11 = vadd.f32 %v156_v10, %v28_v9  ;;  %v92_v12 = vpop.f32.mrb[1].mxu0 }
  0xdf   :  { %v93_v13 = vadd.f32 %v92_v12, %v28_v9  ;;  %v157_v14 = vpop.f32.mrb[2].mxu0 }
  0xe0   :  { %v144_v15 = vpack.c.bf16 %v101_v11, %v101_v11  ;;  %v104_v16 = vadd.f32 %v157_v14, %v28_v9  ;;  %v95_v17 = vpop.f32.mrb[3].mxu0 }
  0xe1   :  { %v142_v18 = vpack.c.bf16 %v93_v13, %v93_v13  ;;  %v96_v19 = vadd.f32 %v95_v17, %v28_v9 }
  0xe2   :  { %126 = vst.msk [vmem:[%s212_s3 + $0x8] sm:$0xf] %vm123_vm1, %v144_v15  ;;  %v145_v20 = vpack.c.bf16 %v104_v16, %v104_v16 }
  0xe3   :  { %124 = vst.msk [vmem:[%s212_s3] sm:$0xf] %vm123_vm1, %v142_v18  ;;  %v143_v21 = vpack.c.bf16 %v96_v19, %v96_v19 }
  0xe4   :  { %127 = vst.msk [vmem:[%s212_s3 + $0xc] sm:$0xf] %vm123_vm1, %v145_v20 }
  0xe5   :  { %125 = vst.msk [vmem:[%s212_s3 + $0x4] sm:$0xf] %vm123_vm1, %v143_v21 }

// kernel: siglip_vision_transformer.7
= control target key start
LH: loop header
LB: loop body
LE: loop exit
PB: predicated region body
PF: predicated region fallthrough
CT: control target
= control target key end

     0   :  { %s756_s18 = smov 0   ;;  %s758_s19 = smov 0   ;;  %s838_s0 = inlined_call_operand.vmem [shape: bf16[32,32], index: 0, kind: input, shape index: {}]   ;;  %s839_s1 = inlined_call_operand.vmem [shape: bf16[3,32,32], index: 1, kind: input, shape index: {}]   ;;  %s840_s2 = inlined_call_operand.vmem [shape: bf16[3,1,32], index: 2, kind: input, shape index: {}]   ;;  %s841_s3 = inlined_call_operand.vmem [shape: bf16[32,32], index: 3, kind: output, shape index: {0}]   ;;  %s842_s4 = inlined_call_operand.vmem [shape: bf16[32,32], index: 4, kind: output, shape index: {1}]   ;;  %s843_s5 = inlined_call_operand.vmem [shape: bf16[32,32], index: 5, kind: output, shape index: {2}]  }
   0x1   :  { %s760_s20 = smov 0  }
   0x2 LB: > { %s25_s21 = sadd.s32 1, %s720_s19  ;;  %p617_p0 = scmp.ge.s32.totalorder %s724_s20, 1  ;;  %s724_s20 = sphi %s760_s20, %s16_s20   ;;  %s720_s19 = sphi %s758_s19, %s845_s19   ;;  %s716_s18 = sphi %s756_s18, %s844_s18  }
   0x3   : > { %p26_p1 = scmp.ge.s32.totalorder %s25_s21, 3  ;;  %p223_p2 = scmp.lt.s32.totalorder %s724_s20, 4 }
   0x5   : > { %s847_s21 = smov (%p26_p1, %s25_s21), 0  ;;  %p224_p3 = pnand %p617_p0, %p223_p2 }
   0x6   : > { %p275_p4 = scmp.lt.s32.totalorder (!%p224_p3), %s716_s18, 2  ;;  %v700_v0 = vld [vmem:[%s838_s0] sm:$0xff] (!%p224_p3)   ;;  %vm338_vm0 = vcmask (!%p224_p3), 261120   ;;  %v701_v3 = vld [vmem:[%s838_s0 + $0x8] sm:$0xff] (!%p224_p3)   ;;  %v312_v4 = vlaneseq (!%p224_p3)  ;;  %p626_p5 = scmp.ne.s32.totalorder (!%p224_p3), %s716_s18, 0 }
   0x7   : > { %227 = sbr.rel (%p224_p3) target bundleno = 265 (0x109), region = 32  ;;  %670 = vmatprep.mubr.msk.bf16.mxu0 (!%p224_p3), %vm338_vm0, %v700_v0 }
   0x8   : > { %v313_v5 = vshrl.u32 (!%p224_p3), %v312_v4, 7 }
   0xa   : > { %v314_v8 = vsub.s32 (!%p224_p3), 0, %v313_v5 }
   0xe   : > { %s276_s24 = scalar_select %p275_p4, %s716_s18, 2 }
   0xf   : > { %vm414_vm1 = vcmask (!%p626_p5), 257024  }
  0x10   : > { %s649_s25 = sshll.u32 %s276_s24, 4  ;;  %s282_s8 = scalar_lea.vmem %s840_s2, %s276_s24 }
  0x11   : > { %s279_s28 = scalar_lea.vmem %s839_s1, %s649_s25  ;;  %v310_v6 = vld [vmem:[%s282_s8] sm:$0x1] }
  0x12   : > { %v698_v1 = vld [vmem:[%s279_s28] sm:$0xff]   ;;  %v699_v2 = vld [vmem:[%s279_s28 + $0x8] sm:$0xff]   ;;  %v311_v7 = vunpack.c.l.bf16 %v310_v6 }
  0x13   : > { %666 = vmatprep.subr.bf16.mxu0 %v698_v1 }
  0x14   : > { %667 = vmatpush3.bf16.msra.mxu0 %v698_v1  ;;  %v315_v9 = vrot.slane %v311_v7, %v314_v8 }
  0x15   : > { %668 = vmatprep.subr.bf16.mxu0 %v699_v2 }
  0x18   : > { %669 = vmatpush3.bf16.msra.mxu0 %v699_v2 }
  0x1b   : > { %671 = vmatmul.mubr.msk.bf16.vlgmr.msra.gmra.mrb[0].mxu0 %vm338_vm0, %v701_v3 }
  0xec   : > { %399 = sbr.rel (%p626_p5) target bundleno = 247 (0xf7), region = 36 }
  0xee   : > { %v672_v10 = vpop.f32.mrb[0].mxu0 }
  0xef   : > { %v388_v11 = vadd.f32 %v672_v10, %v315_v9  ;;  %v379_v12 = vpop.f32.mrb[1].mxu0 }
  0xf0   : > { %v380_v13 = vadd.f32 %v379_v12, %v315_v9  ;;  %v673_v14 = vpop.f32.mrb[2].mxu0 }
  0xf1   : > { %v391_v15 = vadd.f32 %v673_v14, %v315_v9  ;;  %v382_v16 = vpop.f32.mrb[3].mxu0  ;;  %v652_v20 = vpack.c.bf16 (!%p626_p5), %v388_v11, %v388_v11 }
  0xf2   : > { %v383_v17 = vadd.f32 %v382_v16, %v315_v9  ;;  %v650_v18 = vpack.c.bf16 (!%p626_p5), %v380_v13, %v380_v13 }
  0xf3   : > { %v653_v21 = vpack.c.bf16 %v391_v15, %v391_v15  ;;  %417 = vst.msk [vmem:[%s841_s3 + $0x8] sm:$0xf] %vm414_vm1, %v652_v20 }
  0xf4   : > { %v651_v19 = vpack.c.bf16 %v383_v17, %v383_v17  ;;  %415 = vst.msk [vmem:[%s841_s3] sm:$0xf] %vm414_vm1, %v650_v18 }
  0xf5   : > { %418 = vst.msk [vmem:[%s841_s3 + $0xc] sm:$0xf] %vm414_vm1, %v653_v21 }
  0xf6   : > { %416 = vst.msk [vmem:[%s841_s3 + $0x4] sm:$0xf] %vm414_vm1, %v651_v19 }
  0xf7 PF: > { %p631_p6 = scmp.ne.s32.totalorder %s716_s18, 1 }
  0xf8   : > { %v654_v22 = vpack.c.bf16 (!%p631_p6), %v380_v13, %v380_v13  ;;  %vm437_vm2 = vcmask (!%p631_p6), 257024   ;;  %v655_v23 = vpack.c.bf16 (!%p631_p6), %v383_v17, %v383_v17  ;;  %v656_v24 = vpack.c.bf16 (!%p631_p6), %v388_v11, %v388_v11 }
  0xf9   : > { %422 = sbr.rel (%p631_p6) target bundleno = 256 (0x100), region = 40  ;;  %v657_v25 = vpack.c.bf16 (!%p631_p6), %v391_v15, %v391_v15 }
  0xfa   : > { %438 = vst.msk [vmem:[%s842_s4] sm:$0xf] (!%p631_p6), %vm437_vm2, %v654_v22  ;;  %439 = vst.msk [vmem:[%s842_s4 + $0x4] sm:$0xf] (!%p631_p6), %vm437_vm2, %v655_v23 }
  0xfb   : > { %440 = vst.msk [vmem:[%s842_s4 + $0x8] sm:$0xf] (!%p631_p6), %vm437_vm2, %v656_v24  ;;  %441 = vst.msk [vmem:[%s842_s4 + $0xc] sm:$0xf] (!%p631_p6), %vm437_vm2, %v657_v25 }
 0x100 PF: > { %p636_p7 = scmp.ne.s32.totalorder %s716_s18, 2 }
 0x101   : > { %v658_v26 = vpack.c.bf16 (!%p636_p7), %v380_v13, %v380_v13  ;;  %vm460_vm3 = vcmask (!%p636_p7), 257024   ;;  %v659_v27 = vpack.c.bf16 (!%p636_p7), %v383_v17, %v383_v17  ;;  %v660_v28 = vpack.c.bf16 (!%p636_p7), %v388_v11, %v388_v11 }
 0x102   : > { %445 = sbr.rel (%p636_p7) target bundleno = 265 (0x109), region = 44  ;;  %v661_v29 = vpack.c.bf16 (!%p636_p7), %v391_v15, %v391_v15 }
 0x103   : > { %461 = vst.msk [vmem:[%s843_s5] sm:$0xf] (!%p636_p7), %vm460_vm3, %v658_v26  ;;  %462 = vst.msk [vmem:[%s843_s5 + $0x4] sm:$0xf] (!%p636_p7), %vm460_vm3, %v659_v27 }
 0x104   : > { %463 = vst.msk [vmem:[%s843_s5 + $0x8] sm:$0xf] (!%p636_p7), %vm460_vm3, %v660_v28  ;;  %464 = vst.msk [vmem:[%s843_s5 + $0xc] sm:$0xf] (!%p636_p7), %vm460_vm3, %v661_v29 }
 0x109 PF: > { %s16_s20 = sadd.s32 1, %s724_s20   ;;  %s844_s18 = smov %s720_s19 }
 0x10a   : > { %p13_p8 = scmp.ge.s32.totalorder %s16_s20, 5   ;;  %s845_s19 = smov %s847_s21 }
 0x10c   :  { %15 = sbr.rel (!%p13_p8) target bundleno = 2 (0x2), region = 104 }

// kernel: siglip_vision_transformer.8
= control target key start
LH: loop header
LB: loop body
LE: loop exit
PB: predicated region body
PF: predicated region fallthrough
CT: control target
= control target key end

     0   :  { %s1835_s30 = smov 0   ;;  %s1837_s10 = smov 0   ;;  %s2021_s0 = inlined_call_operand.vmem [shape: bf16[8,16,8], index: 0, kind: input, shape index: {}]   ;;  %s2022_s1 = inlined_call_operand.vmem [shape: bf16[8,16,8], index: 1, kind: input, shape index: {}]   ;;  %s2023_s2 = inlined_call_operand.vmem [shape: bf16[8,16,8], index: 2, kind: input, shape index: {}]   ;;  %s2024_s3 = inlined_call_operand.vmem [shape: bf16[4,8,32], index: 3, kind: input, shape index: {}]   ;;  %s2025_s4 = inlined_call_operand.vmem [shape: bf16[1,32], index: 4, kind: input, shape index: {}]   ;;  %s2026_s5 = inlined_call_operand.vmem [shape: bf16[1,32], index: 5, kind: input, shape index: {}]   ;;  %s2027_s6 = inlined_call_operand.vmem [shape: bf16[1,32], index: 6, kind: input, shape index: {}]   ;;  %s2028_s7 = inlined_call_operand.vmem [shape: bf16[2,16,32], index: 7, kind: input, shape index: {}]   ;;  %s2029_s8 = inlined_call_operand.vmem [shape: bf16[2,16,32], index: 8, kind: output, shape index: {0}]   ;;  %s2030_s9 = inlined_call_operand.vmem [shape: bf16[2,16,32], index: 9, kind: output, shape index: {1}]  }
   0x1   :  { %s1839_s11 = smov 0  }
   0x2 LB: > { %s32_s12 = sadd.s32 1, %s1777_s10  ;;  %p1504_p0 = scmp.ge.s32.totalorder %s1781_s11, 1  ;;  %s1781_s11 = sphi %s1839_s11, %s20_s11   ;;  %s1777_s10 = sphi %s1837_s10, %s2032_s10   ;;  %s1773_s30 = sphi %s1835_s30, %s2031_s30  }
   0x3   : > { %p34_p1 = scmp.ge.s32.totalorder %s32_s12, 2  ;;  %p361_p2 = scmp.lt.s32.totalorder %s1781_s11, 3 }
   0x5   : > { %s2034_s12 = smov (%p34_p1, %s32_s12), 0  ;;  %p362_p3 = pnand %p1504_p0, %p361_p2 }
   0x6   : > { %s1505_s13 = sshll.u32 (!%p362_p3), %s1773_s30, 2  ;;  %v1783_v0 = vmov (!%p362_p3), 0.0   ;;  %vm1784_vm0 = vmmov (!%p362_p3), 0   ;;  %vm500_vm1 = vcmask (!%p362_p3), 64512   ;;  %vm548_vm2 = vcmask (!%p362_p3), 130048   ;;  %p461_p5 = scmp.lt.s32.totalorder (!%p362_p3), %s1773_s30, 1 }
   0x7   : > { %365 = sbr.rel (%p362_p3) target bundleno = 2557 (0x9fd), region = 52  ;;  %1609 = vmatprep.subr.bf16.mxu0 (!%p362_p3), %v1783_v0  ;;  %p430_p4 = scmp.lt.s32.totalorder (!%p362_p3), %s1505_s13, 7  ;;  %1611 = vmatprep.mubr.msk.bf16.mxu0 (!%p362_p3), %vm1784_vm0, %v1783_v0  ;;  %v623_v47 = vld [vmem:[%s2024_s3] sm:$0xf] (!%p362_p3)  ;;  %vm769_vm3 = vcmask (!%p362_p3), 1043456   ;;  %vm481_vm4 = vcmask (!%p362_p3), 261120  }
   0x8   : > { %1615 = vmatprep.subr.bf16.mxu1 (!%p362_p3), %v1783_v0  ;;  %1617 = vmatprep.mubr.msk.bf16.mxu1 (!%p362_p3), %vm1784_vm0, %v1783_v0  ;;  %v818_v48 = vsel (!%p362_p3), %vm769_vm3, %v623_v47, 0  ;;  %v1536_v49 = vld [vmem:[%s2024_s3 + $0x4] sm:$0xf] (!%p362_p3)  ;;  %482 = vst.msk [vmem:[#allocation2] sm:$0xff] (!%p362_p3), %vm481_vm4, %v1783_v0  ;;  %483 = vst.msk [vmem:[#allocation2 + $0x8] sm:$0xff] (!%p362_p3), %vm481_vm4, %v1783_v0  ;;  %vm1320_vm5 = vcmask (!%p362_p3), 257024  }
   0x9   : > { %v771_v50 = vsel (!%p362_p3), %vm769_vm3, %v1536_v49, 0 }
   0xe   : > { %s2036_s13 = smov (!%p430_p4, %s1505_s13), 7  ;;  %s2038_s30 = smov (!%p461_p5, %s1773_s30), 1 }
   0xf   : > { %s1571_s14 = sshll.u32 %s2036_s13, 3  ;;  %s1994_s21 = sshll.u32 %s2038_s30, 3 }
  0x10   : > { %s1865_s17 = scalar_lea.vmem %s2022_s1, %s1571_s14  ;;  %s1870_s20 = scalar_lea.vmem %s2021_s0, %s1571_s14 }
  0x11   : > { %v1707_v1 = vld [vmem:[%s1865_s17] sm:$0xff]   ;;  %s1884_s23 = scalar_lea.vmem %s2023_s2, %s1571_s14  ;;  %v1710_v17 = vld [vmem:[%s1865_s17 + $0x8] sm:$0xff]   ;;  %v1713_v63 = vld [vmem:[%s1865_s17 + $0x10] sm:$0xff]   ;;  %s465_s24 = scalar_lea.vmem %s2028_s7, %s1994_s21 }
  0x12   : > { %v505_v2 = vsel %vm500_vm1, %v1707_v1, 0  ;;  %v1708_v3 = vld [vmem:[%s1870_s20] sm:$0xff]   ;;  %v647_v21 = vsel %vm500_vm1, %v1710_v17, 0  ;;  %v1711_v22 = vld [vmem:[%s1870_s20 + $0x8] sm:$0xff]   ;;  %s470_s26 = scalar_lea.vmem %s2029_s8, %s1994_s21  ;;  %s475_s29 = scalar_lea.vmem %s2030_s9, %s1994_s21 }
  0x13   : > { %1610 = vmatpush3.bf16.xpose.msra.mxu0 %v505_v2  ;;  %v1709_v10 = vld [vmem:[%s1884_s23] sm:$0xff]   ;;  %v1712_v33 = vld [vmem:[%s1884_s23 + $0x8] sm:$0xff]  }
  0x14   : > { %1627 = vmatprep.subr.bf16.mxu0 %v1783_v0  ;;  %1616 = vmatpush3.bf16.msra.mxu1 %v1709_v10 }
  0x15   : > { %1621 = vmatprep.subr.bf16.mxu1 %v1783_v0 }
  0x1a   : > { %1612 = vmatmul.mubr.msk.bf16.vlgmr.msra.gmra.mrb[0].mxu0 %vm500_vm1, %v1708_v3 }
  0x1b   : > { %1629 = vmatprep.mubr.msk.bf16.mxu0 %vm1784_vm0, %v1783_v0  ;;  %1628 = vmatpush3.bf16.msra.mxu0 %v1712_v33 }
  0x1c   : > { %1639 = vmatprep.subr.bf16.mxu0 %v1783_v0 }
  0xed   : > { %v541_v4 = vpop.f32.mrb[0].mxu0 }
  0xee   : > { %v1613_v5 = vpop.f32.mrb[1].mxu0  ;;  %v549_v6 = vsel %vm548_vm2, %v541_v4, -inf }
  0xef   : > { %550 = vmax.xlane.f32.xlu0 %v549_v6  ;;  %v544_v7 = vpop.f32.mrb[2].mxu0 }
  0xf0   : > { %v1614_v8 = vpop.f32.mrb[3].mxu0  ;;  %v552_v9 = vsel %vm548_vm2, %v544_v7, -inf }
  0xf1   : > { %v1714_v8 = vld [vmem:[%s1870_s20 + $0x10] sm:$0xff]  }
  0xf3   : > { %553 = vmax.xlane.f32.xlu0 %v552_v9 }
 0x17c   : > { %v551_v11 = vpop.xlane.xlu0 %550 }
 0x17d   : > { %v555_v12 = vsub.f32 %v541_v4, %v551_v11 }
 0x17f   : > { %v557_v13 = vmul.f32 1.442695, %v555_v12 }
 0x180   : > { %v554_v14 = vpop.xlane.xlu0 %553 }
 0x181   : > { %v556_v15 = vsub.f32 %v544_v7, %v554_v14  ;;  %1719 = vpow2.f32 %v557_v13  ;;  %v884_v7 = vsel %vm500_vm1, %v1713_v63, 0 }
 0x183   : > { %v559_v16 = vmul.f32 1.442695, %v556_v15 }
 0x185   : > { %1721 = vpow2.f32 %v559_v16 }
 0x18b   : > { %v1720_v18 = vpop.eup %1719 }
 0x18c   : > { %v561_v43 = vsel %vm548_vm2, %v1720_v18, 0.0 }
 0x18f   : > { %v1722_v19 = vpop.eup %1721 }
 0x190   : > { %v567_v20 = vpack.c.bf16 %v1722_v19, %v1720_v18  ;;  %v564_v46 = vsel %vm548_vm2, %v1722_v19, 0.0 }
 0x192   : > { %1618 = vmatmul.mubr.msk.bf16.vlgmr.msra.gmra.mrb[0].mxu1 %vm548_vm2, %v567_v20 }
 0x193   : > { %1622 = vmatpush3.bf16.xpose.msra.mxu1 %v647_v21  ;;  %1623 = vmatprep.mubr.msk.bf16.mxu1 %vm1784_vm0, %v1783_v0 }
 0x194   : > { %1633 = vmatprep.subr.bf16.mxu1 %v1783_v0 }
 0x19a   : > { %1624 = vmatmul.mubr.msk.bf16.vlgmr.msra.gmra.mrb[4].mxu1 %vm500_vm1, %v1711_v22 }
 0x19b   : > { %1635 = vmatprep.mubr.msk.bf16.mxu1 %vm1784_vm0, %v1783_v0  ;;  %1634 = vmatpush3.bf16.msra.mxu1 %v771_v50 }
 0x19c   : > { %1645 = vmatprep.subr.bf16.mxu1 %v1783_v0 }
 0x265   : > { %v611_v23 = vpop.f32.mrb[0].mxu1 }
 0x266   : > { %v1619_v24 = vpop.f32.mrb[1].mxu1 }
 0x267   : > { %v614_v25 = vpop.f32.mrb[2].mxu1 }
 0x268   : > { %v1620_v26 = vpop.f32.mrb[3].mxu1 }
 0x26d   : > { %v683_v27 = vpop.f32.mrb[4].mxu1 }
 0x26e   : > { %v1625_v28 = vpop.f32.mrb[5].mxu1  ;;  %v690_v29 = vsel %vm548_vm2, %v683_v27, -inf }
 0x26f   : > { %691 = vmax.xlane.f32.xlu1 %v690_v29  ;;  %v686_v30 = vpop.f32.mrb[6].mxu1 }
 0x270   : > { %v1626_v31 = vpop.f32.mrb[7].mxu1  ;;  %v693_v32 = vsel %vm548_vm2, %v686_v30, -inf }
 0x273   : > { %694 = vmax.xlane.f32.xlu1 %v693_v32  ;;  %v1716_v32 = vld [vmem:[%s1865_s17 + $0x18] sm:$0xff]  }
 0x2fc   : > { %v692_v34 = vpop.xlane.xlu1 %691 }
 0x2fd   : > { %v696_v35 = vsub.f32 %v683_v27, %v692_v34 }
 0x2ff   : > { %v698_v36 = vmul.f32 1.442695, %v696_v35 }
 0x300   : > { %v695_v37 = vpop.xlane.xlu1 %694 }
 0x301   : > { %1723 = vpow2.f32 %v698_v36  ;;  %v697_v38 = vsub.f32 %v686_v30, %v695_v37 }
 0x303   : > { %v700_v39 = vmul.f32 1.442695, %v697_v38  ;;  %v1075_v38 = vsel %vm500_vm1, %v1716_v32, 0 }
 0x305   : > { %1725 = vpow2.f32 %v700_v39  ;;  %v1717_v39 = vld [vmem:[%s1870_s20 + $0x18] sm:$0xff]  }
 0x30b   : > { %v1724_v40 = vpop.eup %1723 }
 0x30c   : > { %v702_v41 = vsel %vm548_vm2, %v1724_v40, 0.0 }
 0x30d   : > { %703 = vadd.xlane.f32.xlu0 %v702_v41 }
 0x30f   : > { %v1726_v42 = vpop.eup %1725 }
 0x310   : > { %v705_v44 = vsel %vm548_vm2, %v1726_v42, 0.0  ;;  %v708_v45 = vpack.c.bf16 %v1726_v42, %v1724_v40  ;;  %v1550_v40 = vld [vmem:[%s2024_s3 + $0x8] sm:$0xf] }
 0x311   : > { %562 = vadd.xlane.f32.xlu0 %v561_v43  ;;  %706 = vadd.xlane.f32.xlu1 %v705_v44  ;;  %v1007_v41 = vsel %vm769_vm3, %v1550_v40, 0 }
 0x312   : > { %1630 = vmatmul.mubr.msk.bf16.vlgmr.msra.gmra.mrb[4].mxu0 %vm548_vm2, %v708_v45 }
 0x313   : > { %1641 = vmatprep.mubr.msk.bf16.mxu0 %vm1784_vm0, %v1783_v0  ;;  %1640 = vmatpush3.bf16.msra.mxu0 %v818_v48 }
 0x314   : > { %1651 = vmatprep.subr.bf16.mxu0 %v1783_v0 }
 0x315   : > { %565 = vadd.xlane.f32.xlu1 %v564_v46 }
 0x39a   : > { %v704_v51 = vpop.xlane.xlu0 %703 }
 0x39e   : > { %v563_v52 = vpop.xlane.xlu0 %562  ;;  %v707_v53 = vpop.xlane.xlu1 %706 }
 0x39f   : > { %1727 = vrcp.f32 %v563_v52 }
 0x3a2   : > { %v566_v54 = vpop.xlane.xlu1 %565 }
 0x3a3   : > { %1729 = vrcp.f32 %v566_v54 }
 0x3a4   : > { %1731 = vrcp.f32 %v704_v51 }
 0x3a5   : > { %1733 = vrcp.f32 %v707_v53 }
 0x3a9   : > { %v1728_v55 = vpop.eup %1727 }
 0x3aa   : > { %v619_v57 = vmul.f32 %v1728_v55, %v611_v23 }
 0x3ad   : > { %v1730_v56 = vpop.eup %1729 }
 0x3ae   : > { %v621_v58 = vmul.f32 %v1730_v56, %v614_v25  ;;  %v1732_v61 = vpop.eup %1731  ;;  %v1715_v25 = vld [vmem:[%s1884_s23 + $0x10] sm:$0xff]  }
 0x3af   : > { %v1734_v1 = vpop.eup %1733 }
 0x3b0   : > { %v622_v59 = vpack.c.bf16 %v621_v58, %v619_v57 }
 0x3b2   : > { %1642 = vmatmul.mubr.msk.bf16.vlgmr.msra.gmra.mrb[8].mxu0 %vm500_vm1, %v622_v59  ;;  %v1718_v59 = vld [vmem:[%s1884_s23 + $0x18] sm:$0xff]  }
 0x3b3   : > { %1653 = vmatprep.mubr.msk.bf16.mxu0 %vm1784_vm0, %v1783_v0  ;;  %1652 = vmatpush3.bf16.msra.mxu0 %v1715_v25 }
 0x3b4   : > { %1663 = vmatprep.subr.bf16.mxu0 %v1783_v0 }
 0x3e5   : > { %v752_v60 = vpop.f32.mrb[4].mxu0 }
 0x3e6   : > { %v1631_v62 = vpop.f32.mrb[5].mxu0  ;;  %v760_v3 = vmul.f32 %v1732_v61, %v752_v60 }
 0x3e7   : > { %v755_v2 = vpop.f32.mrb[6].mxu0 }
 0x3e8   : > { %v762_v4 = vmul.f32 %v1734_v1, %v755_v2  ;;  %v1632_v5 = vpop.f32.mrb[7].mxu0 }
 0x3ea   : > { %v763_v6 = vpack.c.bf16 %v762_v4, %v760_v3 }
 0x3ec   : > { %1636 = vmatmul.mubr.msk.bf16.vlgmr.msra.gmra.mrb[8].mxu1 %vm500_vm1, %v763_v6 }
 0x3ed   : > { %1646 = vmatpush3.bf16.xpose.msra.mxu1 %v884_v7  ;;  %1647 = vmatprep.mubr.msk.bf16.mxu1 %vm1784_vm0, %v1783_v0 }
 0x3ee   : > { %1657 = vmatprep.subr.bf16.mxu1 %v1783_v0 }
 0x3f4   : > { %1648 = vmatmul.mubr.msk.bf16.vlgmr.msra.gmra.mrb[12].mxu1 %vm500_vm1, %v1714_v8  ;;  %v1563_v8 = vld [vmem:[%s2024_s3 + $0xc] sm:$0xf] }
 0x3f5   : > { %1659 = vmatprep.mubr.msk.bf16.mxu1 %vm1784_vm0, %v1783_v0  ;;  %1658 = vmatpush3.bf16.msra.mxu1 %v1007_v41 }
 0x3f6   : > { %1669 = vmatprep.subr.bf16.mxu1 %v1783_v0 }
 0x485   : > { %v854_v9 = vpop.f32.mrb[8].mxu0 }
 0x486   : > { %v1643_v10 = vpop.f32.mrb[9].mxu0 }
 0x487   : > { %v857_v11 = vpop.f32.mrb[10].mxu0 }
 0x488   : > { %v1644_v12 = vpop.f32.mrb[11].mxu0 }
 0x4bf   : > { %v807_v13 = vpop.f32.mrb[8].mxu1 }
 0x4c0   : > { %v1932_v14 = vadd.f32 %v854_v9, %v807_v13  ;;  %v1637_v15 = vpop.f32.mrb[9].mxu1  ;;  %v1198_v9 = vsel %vm769_vm3, %v1563_v8, 0 }
 0x4c1   : > { %v810_v16 = vpop.f32.mrb[10].mxu1 }
 0x4c2   : > { %v1934_v17 = vadd.f32 %v857_v11, %v810_v16  ;;  %v1638_v18 = vpop.f32.mrb[11].mxu1 }
 0x4c7   : > { %v920_v19 = vpop.f32.mrb[12].mxu1 }
 0x4c8   : > { %v1649_v20 = vpop.f32.mrb[13].mxu1  ;;  %v927_v21 = vsel %vm548_vm2, %v920_v19, -inf }
 0x4c9   : > { %928 = vmax.xlane.f32.xlu0 %v927_v21  ;;  %v923_v22 = vpop.f32.mrb[14].mxu1 }
 0x4ca   : > { %v1650_v23 = vpop.f32.mrb[15].mxu1  ;;  %v930_v24 = vsel %vm548_vm2, %v923_v22, -inf }
 0x4cb   : > { %931 = vmax.xlane.f32.xlu1 %v930_v24 }
 0x556   : > { %v929_v26 = vpop.xlane.xlu0 %928 }
 0x557   : > { %v933_v27 = vsub.f32 %v920_v19, %v929_v26 }
 0x558   : > { %v932_v28 = vpop.xlane.xlu1 %931 }
 0x559   : > { %v935_v29 = vmul.f32 1.442695, %v933_v27  ;;  %v934_v30 = vsub.f32 %v923_v22, %v932_v28  ;;  %v1257_v27 = vlaneseq }
 0x55b   : > { %1735 = vpow2.f32 %v935_v29  ;;  %v937_v31 = vmul.f32 1.442695, %v934_v30  ;;  %v1243_v29 = vld [vmem:[#allocation2] sm:$0xff] }
 0x55d   : > { %1737 = vpow2.f32 %v937_v31  ;;  %v1258_v31 = vshrl.u32 %v1257_v27, 7 }
 0x55f   : > { %v1259_v40 = vsub.s32 0, %v1258_v31 }
 0x565   : > { %v1736_v33 = vpop.eup %1735 }
 0x566   : > { %v939_v34 = vsel %vm548_vm2, %v1736_v33, 0.0 }
 0x567   : > { %v1738_v35 = vpop.eup %1737  ;;  %940 = vadd.xlane.f32.xlu0 %v939_v34  ;;  %v1255_v34 = vld [vmem:[%s2025_s4] sm:$0x1] }
 0x568   : > { %v942_v36 = vsel %vm548_vm2, %v1738_v35, 0.0  ;;  %v945_v37 = vpack.c.bf16 %v1738_v35, %v1736_v33  ;;  %v1244_v33 = vld [vmem:[#allocation2 + $0x8] sm:$0xff] }
 0x569   : > { %943 = vadd.xlane.f32.xlu1 %v942_v36 }
 0x56a   : > { %1654 = vmatmul.mubr.msk.bf16.vlgmr.msra.gmra.mrb[12].mxu0 %vm548_vm2, %v945_v37 }
 0x56b   : > { %1664 = vmatpush3.bf16.xpose.msra.mxu0 %v1075_v38  ;;  %1665 = vmatprep.mubr.msk.bf16.mxu0 %vm1784_vm0, %v1783_v0 }
 0x56c   : > { %1675 = vmatprep.subr.bf16.mxu0 %v1783_v0 }
 0x572   : > { %1666 = vmatmul.mubr.msk.bf16.vlgmr.msra.gmra.mrb[16].mxu0 %vm500_vm1, %v1717_v39  ;;  %v1256_v39 = vunpack.c.l.bf16 %v1255_v34 }
 0x573   : > { %1677 = vmatprep.mubr.msk.bf16.mxu0 %vm1784_vm0, %v1783_v0  ;;  %1676 = vmatpush3.bf16.msra.mxu0 %v1198_v9 }
 0x574   : > { %v1260_v41 = vrot.slane %v1256_v39, %v1259_v40 }
 0x5f4   : > { %v941_v42 = vpop.xlane.xlu0 %940 }
 0x5f5   : > { %1739 = vrcp.f32 %v941_v42 }
 0x5f6   : > { %v944_v43 = vpop.xlane.xlu1 %943 }
 0x5f7   : > { %1741 = vrcp.f32 %v944_v43 }
 0x5ff   : > { %v1740_v45 = vpop.eup %1739 }
 0x601   : > { %v1742_v47 = vpop.eup %1741 }
 0x63d   : > { %v989_v44 = vpop.f32.mrb[12].mxu0 }
 0x63e   : > { %v1655_v46 = vpop.f32.mrb[13].mxu0  ;;  %v997_v49 = vmul.f32 %v1740_v45, %v989_v44 }
 0x63f   : > { %v992_v48 = vpop.f32.mrb[14].mxu0 }
 0x640   : > { %v999_v50 = vmul.f32 %v1742_v47, %v992_v48  ;;  %v1656_v51 = vpop.f32.mrb[15].mxu0 }
 0x642   : > { %v1000_v52 = vpack.c.bf16 %v999_v50, %v997_v49 }
 0x644   : > { %1660 = vmatmul.mubr.msk.bf16.vlgmr.msra.gmra.mrb[16].mxu1 %vm500_vm1, %v1000_v52 }
 0x645   : > { %v1111_v53 = vpop.f32.mrb[16].mxu0  ;;  %1671 = vmatprep.mubr.msk.bf16.mxu1 %vm1784_vm0, %v1783_v0  ;;  %1670 = vmatpush3.bf16.msra.mxu1 %v1718_v59 }
 0x646   : > { %v1667_v54 = vpop.f32.mrb[17].mxu0  ;;  %v1118_v55 = vsel %vm548_vm2, %v1111_v53, -inf }
 0x647   : > { %1119 = vmax.xlane.f32.xlu0 %v1118_v55  ;;  %v1114_v56 = vpop.f32.mrb[18].mxu0 }
 0x648   : > { %v1668_v57 = vpop.f32.mrb[19].mxu0  ;;  %v1121_v58 = vsel %vm548_vm2, %v1114_v56, -inf }
 0x649   : > { %1122 = vmax.xlane.f32.xlu1 %v1121_v58 }
 0x6d4   : > { %v1120_v60 = vpop.xlane.xlu0 %1119 }
 0x6d5   : > { %v1124_v61 = vsub.f32 %v1111_v53, %v1120_v60 }
 0x6d6   : > { %v1123_v62 = vpop.xlane.xlu1 %1122 }
 0x6d7   : > { %v1126_v63 = vmul.f32 1.442695, %v1124_v61  ;;  %v1125_v1 = vsub.f32 %v1114_v56, %v1123_v62 }
 0x6d9   : > { %1743 = vpow2.f32 %v1126_v63  ;;  %v1128_v2 = vmul.f32 1.442695, %v1125_v1  ;;  %v1290_v1 = vld [vmem:[%s2026_s5] sm:$0x1] }
 0x6db   : > { %1745 = vpow2.f32 %v1128_v2  ;;  %v1298_v2 = vld [vmem:[%s2027_s6] sm:$0x1] }
 0x6e3   : > { %v1744_v3 = vpop.eup %1743 }
 0x6e4   : > { %v1130_v4 = vsel %vm548_vm2, %v1744_v3, 0.0 }
 0x6e5   : > { %v1746_v5 = vpop.eup %1745  ;;  %1131 = vadd.xlane.f32.xlu0 %v1130_v4  ;;  %v1299_v4 = vunpack.c.l.bf16 %v1298_v2 }
 0x6e6   : > { %v1133_v6 = vsel %vm548_vm2, %v1746_v5, 0.0  ;;  %v1136_v7 = vpack.c.bf16 %v1746_v5, %v1744_v3  ;;  %v1291_v3 = vunpack.c.l.bf16 %v1290_v1 }
 0x6e7   : > { %1134 = vadd.xlane.f32.xlu1 %v1133_v6  ;;  %v1303_v8 = vrot.slane %v1299_v4, %v1259_v40 }
 0x6e8   : > { %1672 = vmatmul.mubr.msk.bf16.vlgmr.msra.gmra.mrb[20].mxu1 %vm548_vm2, %v1136_v7  ;;  %v1295_v5 = vrot.slane %v1291_v3, %v1259_v40  ;;  %v1582_v7 = vld [vmem:[%s465_s24] sm:$0xff]  }
 0x717   : > { %v1043_v10 = vpop.f32.mrb[16].mxu1 }
 0x718   : > { %v1050_v11 = vadd.f32 %v1043_v10, %v1932_v14  ;;  %v1661_v12 = vpop.f32.mrb[17].mxu1 }
 0x719   : > { %v1046_v13 = vpop.f32.mrb[18].mxu1 }
 0x71a   : > { %v1051_v15 = vadd.f32 %v1046_v13, %v1934_v17  ;;  %v1662_v16 = vpop.f32.mrb[19].mxu1 }
 0x71b   : > { %v1584_v16 = vunpack.c.h.bf16 %v1582_v7 }
 0x772   : > { %v1132_v18 = vpop.xlane.xlu0 %1131 }
 0x773   : > { %1747 = vrcp.f32 %v1132_v18 }
 0x774   : > { %v1135_v19 = vpop.xlane.xlu1 %1134 }
 0x775   : > { %1749 = vrcp.f32 %v1135_v19 }
 0x77d   : > { %v1748_v21 = vpop.eup %1747 }
 0x77f   : > { %v1750_v14 = vpop.eup %1749 }
 0x7bb   : > { %v1180_v20 = vpop.f32.mrb[20].mxu1 }
 0x7bc   : > { %v1673_v22 = vpop.f32.mrb[21].mxu1  ;;  %v1188_v24 = vmul.f32 %v1748_v21, %v1180_v20 }
 0x7bd   : > { %v1183_v23 = vpop.f32.mrb[22].mxu1 }
 0x7be   : > { %v1190_v25 = vmul.f32 %v1750_v14, %v1183_v23  ;;  %v1674_v17 = vpop.f32.mrb[23].mxu1 }
 0x7c0   : > { %v1191_v26 = vpack.c.bf16 %v1190_v25, %v1188_v24 }
 0x7c2   : > { %1678 = vmatmul.mubr.msk.bf16.vlgmr.msra.gmra.mrb[20].mxu0 %vm500_vm1, %v1191_v26 }
 0x895   : > { %v1234_v28 = vpop.f32.mrb[20].mxu0 }
 0x896   : > { %v1241_v30 = vadd.f32 %v1234_v28, %v1050_v11  ;;  %v1679_v0 = vpop.f32.mrb[21].mxu0  ;;  %v1583_v11 = vunpack.c.l.bf16 %v1582_v7 }
 0x897   : > { %v1237_v32 = vpop.f32.mrb[22].mxu0 }
 0x898   : > { %v1245_v35 = vadd.f32 %v1243_v29, %v1241_v30  ;;  %v1242_v36 = vadd.f32 %v1237_v32, %v1051_v15  ;;  %v1680_v37 = vpop.f32.mrb[23].mxu0 }
 0x89a   : > { %1248 = vst.msk [vmem:[#allocation2] sm:$0xff] %vm481_vm4, %v1245_v35  ;;  %v1246_v38 = vadd.f32 %v1244_v33, %v1242_v36 }
 0x89c   : > { %1249 = vst.msk [vmem:[#allocation2 + $0x8] sm:$0xff] %vm481_vm4, %v1246_v38 }
 0x8a1   : > { %v1253_v42 = vld [vmem:[#allocation2] sm:$0xff] }
 0x8a2   : > { %v1261_v43 = vadd.f32 %v1260_v41, %v1253_v42 }
 0x8a3   : > { %v1254_v44 = vld [vmem:[#allocation2 + $0x8] sm:$0xff] }
 0x8a4   : > { %v1263_v45 = vsel %vm481_vm4, %v1261_v43, 0.0  ;;  %v1262_v46 = vadd.f32 %v1260_v41, %v1254_v44 }
 0x8a5   : > { %1264 = vadd.xlane.f32.xlu0 %v1263_v45 }
 0x8a6   : > { %v1266_v47 = vsel %vm481_vm4, %v1262_v46, 0.0 }
 0x8a7   : > { %1267 = vadd.xlane.f32.xlu1 %v1266_v47 }
 0x932   : > { %v1265_v48 = vpop.xlane.xlu0 %1264 }
 0x933   : > { %v1270_v49 = vmul.f32 0.03125, %v1265_v48 }
 0x934   : > { %v1268_v50 = vpop.xlane.xlu1 %1267 }
 0x935   : > { %v1272_v51 = vsub.f32 %v1261_v43, %v1270_v49  ;;  %v1271_v52 = vmul.f32 0.03125, %v1268_v50 }
 0x937   : > { %v1273_v53 = vsub.f32 %v1262_v46, %v1271_v52  ;;  %v1274_v54 = vmul.f32 %v1272_v51, %v1272_v51 }
 0x939   : > { %v1276_v55 = vsel %vm481_vm4, %v1274_v54, 0.0  ;;  %v1275_v56 = vmul.f32 %v1273_v53, %v1273_v53 }
 0x93a   : > { %1277 = vadd.xlane.f32.xlu0 %v1276_v55 }
 0x93b   : > { %v1279_v57 = vsel %vm481_vm4, %v1275_v56, 0.0 }
 0x93c   : > { %1280 = vadd.xlane.f32.xlu1 %v1279_v57 }
 0x9c7   : > { %v1278_v58 = vpop.xlane.xlu0 %1277 }
 0x9c8   : > { %v1282_v59 = vmul.f32 0.03125, %v1278_v58 }
 0x9c9   : > { %v1281_v60 = vpop.xlane.xlu1 %1280 }
 0x9ca   : > { %v1284_v61 = vadd.f32 1e-06, %v1282_v59  ;;  %v1283_v62 = vmul.f32 0.03125, %v1281_v60 }
 0x9cc   : > { %1751 = vrsqrt.f32 %v1284_v61  ;;  %v1285_v63 = vadd.f32 1e-06, %v1283_v62 }
 0x9ce   : > { %1753 = vrsqrt.f32 %v1285_v63 }
 0x9d6   : > { %v1752_v6 = vpop.eup %1751 }
 0x9d7   : > { %v1288_v9 = vmul.f32 %v1752_v6, %v1272_v51 }
 0x9d8   : > { %v1754_v10 = vpop.eup %1753 }
 0x9d9   : > { %v1296_v12 = vmul.f32 %v1295_v5, %v1288_v9  ;;  %v1289_v13 = vmul.f32 %v1754_v10, %v1273_v53 }
 0x9db   : > { %v1304_v15 = vadd.f32 %v1303_v8, %v1296_v12  ;;  %v1297_v18 = vmul.f32 %v1295_v5, %v1289_v13 }
 0x9dd   : > { %v1310_v19 = vadd.f32 %v1583_v11, %v1304_v15  ;;  %v1305_v20 = vadd.f32 %v1303_v8, %v1297_v18 }
 0x9df   : > { %v1577_v21 = vpack.c.bf16 %v1310_v19, %v1310_v19  ;;  %v1325_v22 = vmul.f32 0.044715, %v1310_v19  ;;  %v1311_v14 = vadd.f32 %v1584_v16, %v1305_v20  ;;  %v1323_v32 = vmul.f32 0.5, %v1310_v19 }
 0x9e1   : > { %1321 = vst.msk [vmem:[%s470_s26] sm:$0xf] %vm1320_vm5, %v1577_v21  ;;  %v1327_v23 = vmul.f32 %v1325_v22, %v1310_v19  ;;  %v1578_v24 = vpack.c.bf16 %v1311_v14, %v1311_v14  ;;  %v1326_v25 = vmul.f32 0.044715, %v1311_v14  ;;  %v1324_v36 = vmul.f32 0.5, %v1311_v14 }
 0x9e3   : > { %v1329_v17 = vmul.f32 %v1327_v23, %v1310_v19  ;;  %1322 = vst.msk [vmem:[%s470_s26 + $0x4] sm:$0xf] %vm1320_vm5, %v1578_v24  ;;  %v1328_v26 = vmul.f32 %v1326_v25, %v1311_v14 }
 0x9e5   : > { %v1331_v27 = vadd.f32 %v1329_v17, %v1310_v19  ;;  %v1330_v28 = vmul.f32 %v1328_v26, %v1311_v14 }
 0x9e7   : > { %v1333_v29 = vmul.f32 0.7978846, %v1331_v27  ;;  %v1332_v30 = vadd.f32 %v1330_v28, %v1311_v14 }
 0x9e9   : > { %1755 = vtanh.f32 %v1333_v29  ;;  %v1334_v0 = vmul.f32 0.7978846, %v1332_v30 }
 0x9eb   : > { %1757 = vtanh.f32 %v1334_v0 }
 0x9f3   : > { %v1756_v31 = vpop.eup %1755 }
 0x9f4   : > { %v1337_v33 = vadd.f32 1.0, %v1756_v31 }
 0x9f5   : > { %v1758_v34 = vpop.eup %1757 }
 0x9f6   : > { %v1339_v35 = vmul.f32 %v1337_v33, %v1323_v32  ;;  %v1338_v37 = vadd.f32 1.0, %v1758_v34 }
 0x9f8   : > { %v1579_v38 = vpack.c.bf16 %v1339_v35, %v1339_v35  ;;  %v1340_v39 = vmul.f32 %v1338_v37, %v1324_v36 }
 0x9fa   : > { %1349 = vst.msk [vmem:[%s475_s29] sm:$0xf] %vm1320_vm5, %v1579_v38  ;;  %v1580_v40 = vpack.c.bf16 %v1340_v39, %v1340_v39 }
 0x9fc   : > { %1350 = vst.msk [vmem:[%s475_s29 + $0x4] sm:$0xf] %vm1320_vm5, %v1580_v40 }
 0x9fd PF: > { %s20_s11 = sadd.s32 1, %s1781_s11   ;;  %s2031_s30 = smov %s1777_s10 }
 0x9fe   : > { %p17_p6 = scmp.ge.s32.totalorder %s20_s11, 4   ;;  %s2032_s10 = smov %s2034_s12 }
 0xa00   :  { %19 = sbr.rel (!%p17_p6) target bundleno = 2 (0x2), region = 126 }

// kernel: siglip_vision_transformer.11
= control target key start
LH: loop header
LB: loop body
LE: loop exit
PB: predicated region body
PF: predicated region fallthrough
CT: control target
= control target key end

     0   :  { %vm23_vm0 = vcmask 261120   ;;  %s245_s0 = inlined_call_operand.vmem [shape: bf16[32,32], index: 0, kind: input, shape index: {}]   ;;  %s246_s1 = inlined_call_operand.vmem [shape: bf16[1,32], index: 1, kind: input, shape index: {}]   ;;  %s247_s2 = inlined_call_operand.vmem [shape: bf16[1,32], index: 2, kind: input, shape index: {}]   ;;  %s248_s3 = inlined_call_operand.hbm [shape: bf16[32,32], index: 3, kind: output, shape index: {}]  }
   0x1   :  { %v143_v0 = vld [vmem:[%s245_s0] sm:$0xff]   ;;  %v150_v1 = vld [vmem:[%s245_s0 + $0x8] sm:$0xff]  }
   0x2   :  { %8 = vsyncpa [#allocation3], 0  ;;  %v144_v2 = vunpack.c.l.bf16 %v143_v0  ;;  %v148_v3 = vunpack.c.l.bf16 %v150_v1  ;;  %v145_v4 = vunpack.c.h.bf16 %v143_v0  ;;  %v149_v5 = vunpack.c.h.bf16 %v150_v1  ;;  %v77_v39 = vld [vmem:[%s246_s1] sm:$0x1]  ;;  %s186_s1 = smov [#allocation2]  }
   0x3   :  { %v79_v32 = vlaneseq  ;;  %v87_v43 = vld [vmem:[%s247_s2] sm:$0x1]  ;;  %v78_v45 = vunpack.c.l.bf16 %v77_v39  ;;  %vm113_vm1 = vcmask 257024   ;;  %s123_s2 = sshll.u32 %s186_s1, 4  ;;  %s124_s2 = int_to_ptr.vmem [resolvable:$true] %s123_s2 }
   0x4   :  { %v24_v6 = vsel %vm23_vm0, %v144_v2, 0.0  ;;  %v30_v7 = vsel %vm23_vm0, %v148_v3, 0.0  ;;  %v27_v8 = vsel %vm23_vm0, %v145_v4, 0.0  ;;  %v33_v9 = vsel %vm23_vm0, %v149_v5, 0.0  ;;  %s162_s19 = scalar_lea.vmem %s124_s2, 256  ;;  %p167_p1 = scmp.lt.s32.totalorder %s124_s2, %s124_s2 }
   0x5   :  { %25 = vadd.xlane.f32.xlu0 %v24_v6  ;;  %31 = vadd.xlane.f32.xlu1 %v30_v7  ;;  %v80_v38 = vshrl.u32 %v79_v32, 7  ;;  %v88_v48 = vunpack.c.l.bf16 %v87_v43  ;;  %p163_p0 = scmp.ne.s32.totalorder %s124_s2, %s162_s19  ;;  %p168_p2 = scmp.lt.s32.totalorder %s162_s19, %s162_s19 }
   0x7   :  { %v81_v46 = vsub.s32 0, %v80_v38  ;;  %p169_p3 = por %p168_p2, %p167_p1 }
   0x9   :  { %28 = vadd.xlane.f32.xlu0 %v27_v8  ;;  %34 = vadd.xlane.f32.xlu1 %v33_v9  ;;  %v82_v49 = vrot.slane %v78_v45, %v81_v46  ;;  %v92_v51 = vrot.slane %v88_v48, %v81_v46  ;;  %p170_p4 = pnand %p169_p3, %p163_p0 }
  0x92   :  { %v26_v10 = vpop.xlane.xlu0 %25  ;;  %v32_v11 = vpop.xlane.xlu1 %31 }
  0x93   :  { %v37_v12 = vmul.f32 0.03125, %v26_v10  ;;  %v39_v13 = vmul.f32 0.03125, %v32_v11 }
  0x95   :  { %v41_v14 = vsub.f32 %v144_v2, %v37_v12  ;;  %v43_v15 = vsub.f32 %v148_v3, %v39_v13 }
  0x96   :  { %v29_v16 = vpop.xlane.xlu0 %28  ;;  %v35_v17 = vpop.xlane.xlu1 %34 }
  0x97   :  { %v38_v18 = vmul.f32 0.03125, %v29_v16  ;;  %v40_v19 = vmul.f32 0.03125, %v35_v17  ;;  %v45_v20 = vmul.f32 %v41_v14, %v41_v14  ;;  %v47_v21 = vmul.f32 %v43_v15, %v43_v15 }
  0x99   :  { %v42_v22 = vsub.f32 %v145_v4, %v38_v18  ;;  %v44_v23 = vsub.f32 %v149_v5, %v40_v19  ;;  %v49_v24 = vsel %vm23_vm0, %v45_v20, 0.0  ;;  %v55_v25 = vsel %vm23_vm0, %v47_v21, 0.0 }
  0x9a   :  { %50 = vadd.xlane.f32.xlu0 %v49_v24 }
  0x9b   :  { %v46_v26 = vmul.f32 %v42_v22, %v42_v22  ;;  %v48_v27 = vmul.f32 %v44_v23, %v44_v23 }
  0x9d   :  { %v52_v28 = vsel %vm23_vm0, %v46_v26, 0.0  ;;  %v58_v29 = vsel %vm23_vm0, %v48_v27, 0.0 }
  0x9e   :  { %56 = vadd.xlane.f32.xlu0 %v55_v25  ;;  %53 = vadd.xlane.f32.xlu1 %v52_v28 }
  0xa2   :  { %59 = vadd.xlane.f32.xlu1 %v58_v29 }
 0x127   :  { %v51_v30 = vpop.xlane.xlu0 %50 }
 0x128   :  { %v61_v31 = vmul.f32 0.03125, %v51_v30 }
 0x12a   :  { %v65_v33 = vadd.f32 1e-06, %v61_v31 }
 0x12b   :  { %v54_v34 = vpop.xlane.xlu1 %53  ;;  %v57_v35 = vpop.xlane.xlu0 %56 }
 0x12c   :  { %154 = vrsqrt.f32 %v65_v33  ;;  %v62_v36 = vmul.f32 0.03125, %v54_v34  ;;  %v63_v37 = vmul.f32 0.03125, %v57_v35 }
 0x12e   :  { %v66_v40 = vadd.f32 1e-06, %v62_v36  ;;  %v67_v41 = vadd.f32 1e-06, %v63_v37 }
 0x12f   :  { %v60_v42 = vpop.xlane.xlu1 %59 }
 0x130   :  { %156 = vrsqrt.f32 %v66_v40  ;;  %v64_v44 = vmul.f32 0.03125, %v60_v42 }
 0x131   :  { %158 = vrsqrt.f32 %v67_v41 }
 0x132   :  { %v68_v47 = vadd.f32 1e-06, %v64_v44 }
 0x134   :  { %160 = vrsqrt.f32 %v68_v47 }
 0x136   :  { %v155_v50 = vpop.eup %154 }
 0x137   :  { %v73_v52 = vmul.f32 %v155_v50, %v41_v14 }
 0x139   :  { %v83_v53 = vmul.f32 %v82_v49, %v73_v52 }
 0x13a   :  { %v157_v54 = vpop.eup %156 }
 0x13b   :  { %v159_v55 = vpop.eup %158  ;;  %v93_v56 = vadd.f32 %v92_v51, %v83_v53  ;;  %v74_v57 = vmul.f32 %v157_v54, %v42_v22 }
 0x13c   :  { %v75_v58 = vmul.f32 %v159_v55, %v43_v15 }
 0x13d   :  { %v138_v59 = vpack.c.bf16 %v93_v56, %v93_v56  ;;  %v84_v60 = vmul.f32 %v82_v49, %v74_v57 }
 0x13e   :  { %v161_v61 = vpop.eup %160  ;;  %v85_v62 = vmul.f32 %v82_v49, %v75_v58 }
 0x13f   :  { %v94_v63 = vadd.f32 %v92_v51, %v84_v60  ;;  %v76_v0 = vmul.f32 %v161_v61, %v44_v23  ;;  %114 = vst.msk [vmem:[#allocation2] sm:$0xf] %vm113_vm1, %v138_v59 }
 0x140   :  { %v95_v1 = vadd.f32 %v92_v51, %v85_v62 }
 0x141   :  { %v139_v2 = vpack.c.bf16 %v94_v63, %v94_v63  ;;  %v86_v3 = vmul.f32 %v82_v49, %v76_v0 }
 0x142   :  { %v140_v4 = vpack.c.bf16 %v95_v1, %v95_v1 }
 0x143   :  { %v96_v5 = vadd.f32 %v92_v51, %v86_v3  ;;  %115 = vst.msk [vmem:[#allocation2 + $0x4] sm:$0xf] %vm113_vm1, %v139_v2 }
 0x144   :  { %116 = vst.msk [vmem:[#allocation2 + $0x8] sm:$0xf] %vm113_vm1, %v140_v4 }
 0x145   :  { %v141_v6 = vpack.c.bf16 %v96_v5, %v96_v5 }
 0x147   :  { %117 = vst.msk [vmem:[#allocation2 + $0xc] sm:$0xf] %vm113_vm1, %v141_v6 }
 0x148   :  { %173 = shalt.err (!%p170_p4)
}
 0x149   :  { %s174_s22 = scalar_lea.hbm %s248_s3, 256 }
 0x14a   :  { %p175_p5 = scmp.ne.s32.totalorder %s248_s3, %s174_s22  ;;  %p178_p6 = scmp.lt.u32.totalorder %s174_s22, %s248_s3 }
 0x14c   :  { %p180_p7 = pnand %p178_p6, %p175_p5 }
 0x14e   :  { %183 = shalt.err (!%p180_p7)
}
 0x14f   :  { %s187_s27 = smov 64   ;;  %s188_s28 = smov 4  }
 0x150   :  { %129 = dma.vmem_to_hbm [thread:$0]  %s124_s2, 256, %s248_s3, [#allocation3], %s187_s27, %s187_s27, %s188_s28  }
 0x151   :  { %184 = dma.done.wait [#allocation3], 256  }
 0x152   :  { %185 = vsyncadd [#allocation3], 4294967040 }
 0x153   :  { %133 = vsyncpa [#allocation3], 1 }

// kernel: siglip_vision_transformer.10
= control target key start
LH: loop header
LB: loop body
LE: loop exit
PB: predicated region body
PF: predicated region fallthrough
CT: control target
= control target key end

     0   :  { %vm28_vm0 = vcmask 261120   ;;  %v333_v1 = vmov 0.0   ;;  %vm83_vm1 = vcmask 523264   ;;  %v157_v7 = vlaneseq  ;;  %s439_s1 = inlined_call_operand.vmem [shape: bf16[64,32], index: 1, kind: input, shape index: {}]   ;;  %s440_s0 = inlined_call_operand.vmem [shape: bf16[32,64], index: 0, kind: input, shape index: {}]   ;;  %s441_s2 = inlined_call_operand.vmem [shape: bf16[1,32], index: 2, kind: input, shape index: {}]   ;;  %s442_s3 = inlined_call_operand.vmem [shape: bf16[1,32], index: 3, kind: input, shape index: {}]   ;;  %s443_s4 = inlined_call_operand.vmem [shape: bf16[1,32], index: 4, kind: input, shape index: {}]   ;;  %s444_s5 = inlined_call_operand.vmem [shape: bf16[32,32], index: 5, kind: input, shape index: {}]   ;;  %s445_s6 = inlined_call_operand.vmem [shape: bf16[32,32], index: 6, kind: output, shape index: {}]  }
   0x1   :  { %v319_v0 = vld [vmem:[%s439_s1] sm:$0xff]   ;;  %31 = vst.msk [vmem:[#allocation2 + $0x10] sm:$0xff] %vm28_vm0, %v333_v1  ;;  %29 = vst.msk [vmem:[#allocation2] sm:$0xff] %vm28_vm0, %v333_v1  ;;  %v320_v2 = vld [vmem:[%s439_s1 + $0x8] sm:$0xff]   ;;  %vm266_vm2 = vcmask 257024  }
   0x2   :  { %30 = vst.msk [vmem:[#allocation2 + $0x8] sm:$0xff] %vm28_vm0, %v333_v1  ;;  %32 = vst.msk [vmem:[#allocation2 + $0x18] sm:$0xff] %vm28_vm0, %v333_v1  ;;  %306 = vmatprep.subr.bf16.mxu0 %v319_v0  ;;  %v321_v3 = vld [vmem:[%s439_s1 + $0x10] sm:$0xff]   ;;  %v323_v4 = vld [vmem:[%s440_s0] sm:$0xff]   ;;  %v158_v10 = vshrl.u32 %v157_v7, 7 }
   0x3   :  { %307 = vmatpush3.bf16.msra.mxu0 %v319_v0  ;;  %314 = vmatprep.mubr.msk.bf16.mxu0 %vm83_vm1, %v323_v4  ;;  %v322_v5 = vld [vmem:[%s439_s1 + $0x18] sm:$0xff]   ;;  %v324_v6 = vld [vmem:[%s440_s0 + $0x8] sm:$0xff]   ;;  %v155_v13 = vld [vmem:[%s441_s2] sm:$0x1] }
   0x4   :  { %308 = vmatprep.subr.bf16.mxu0 %v320_v2  ;;  %v156_v21 = vunpack.c.l.bf16 %v155_v13  ;;  %v395_v22 = vsub.s32 0, %v158_v10  ;;  %v218_v0 = vld [vmem:[%s442_s3] sm:$0x1] }
   0x5   :  { %v228_v4 = vld [vmem:[%s443_s4] sm:$0x1] }
   0x6   :  { %v160_v24 = vrot.slane %v156_v21, %v395_v22 }
   0x7   :  { %309 = vmatpush3.bf16.msra.mxu0 %v320_v2 }
   0x8   :  { %310 = vmatprep.subr.bf16.mxu0 %v321_v3  ;;  %v35_v8 = vld [vmem:[#allocation2 + $0x10] sm:$0xff]  ;;  %v33_v9 = vld [vmem:[#allocation2] sm:$0xff] }
   0x9   :  { %v36_v12 = vld [vmem:[#allocation2 + $0x18] sm:$0xff]  ;;  %v34_v16 = vld [vmem:[#allocation2 + $0x8] sm:$0xff] }
   0xb   :  { %311 = vmatpush3.bf16.msra.mxu0 %v321_v3 }
   0xc   :  { %312 = vmatprep.subr.bf16.mxu0 %v322_v5 }
   0xf   :  { %313 = vmatpush3.bf16.msra.mxu0 %v322_v5 }
  0x12   :  { %315 = vmatmul.mubr.msk.bf16.vlgmr.msra.gmra.mrb[0].mxu0 %vm83_vm1, %v324_v6  ;;  %v219_v6 = vunpack.c.l.bf16 %v218_v0 }
  0xe5   :  { %v316_v11 = vpop.f32.mrb[0].mxu0 }
  0xe6   :  { %v141_v14 = vadd.f32 %v316_v11, %v35_v8  ;;  %v124_v15 = vpop.f32.mrb[1].mxu0  ;;  %v229_v8 = vunpack.c.l.bf16 %v228_v4  ;;  %v292_v11 = vld [vmem:[%s444_s5] sm:$0xff]  }
  0xe7   :  { %v139_v17 = vadd.f32 %v124_v15, %v33_v9  ;;  %v317_v18 = vpop.f32.mrb[2].mxu0  ;;  %v223_v9 = vrot.slane %v219_v6, %v395_v22 }
  0xe8   :  { %146 = vst.msk [vmem:[#allocation2 + $0x10] sm:$0xff] %vm28_vm0, %v141_v14  ;;  %v142_v19 = vadd.f32 %v317_v18, %v36_v12  ;;  %v127_v20 = vpop.f32.mrb[3].mxu0  ;;  %v233_v12 = vrot.slane %v229_v8, %v395_v22  ;;  %v293_v14 = vunpack.c.l.bf16 %v292_v11 }
  0xe9   :  { %144 = vst.msk [vmem:[#allocation2] sm:$0xff] %vm28_vm0, %v139_v17  ;;  %v140_v23 = vadd.f32 %v127_v20, %v34_v16  ;;  %v299_v20 = vld [vmem:[%s444_s5 + $0x8] sm:$0xff]  }
  0xea   :  { %147 = vst.msk [vmem:[#allocation2 + $0x18] sm:$0xff] %vm28_vm0, %v142_v19 }
  0xeb   :  { %145 = vst.msk [vmem:[#allocation2 + $0x8] sm:$0xff] %vm28_vm0, %v140_v23 }
  0xef   :  { %v153_v25 = vld [vmem:[#allocation2 + $0x10] sm:$0xff] }
  0xf0   :  { %v163_v26 = vadd.f32 %v160_v24, %v153_v25  ;;  %v151_v27 = vld [vmem:[#allocation2] sm:$0xff] }
  0xf1   :  { %v161_v28 = vadd.f32 %v160_v24, %v151_v27  ;;  %v154_v29 = vld [vmem:[#allocation2 + $0x18] sm:$0xff]  ;;  %v297_v27 = vunpack.c.l.bf16 %v299_v20 }
  0xf2   :  { %v171_v30 = vsel %vm28_vm0, %v163_v26, 0.0  ;;  %v164_v31 = vadd.f32 %v160_v24, %v154_v29  ;;  %v152_v32 = vld [vmem:[#allocation2 + $0x8] sm:$0xff] }
  0xf3   :  { %172 = vadd.xlane.f32.xlu1 %v171_v30  ;;  %v165_v33 = vsel %vm28_vm0, %v161_v28, 0.0  ;;  %v162_v34 = vadd.f32 %v160_v24, %v152_v32  ;;  %v294_v24 = vunpack.c.h.bf16 %v292_v11 }
  0xf4   :  { %166 = vadd.xlane.f32.xlu0 %v165_v33  ;;  %v174_v35 = vsel %vm28_vm0, %v164_v31, 0.0  ;;  %v298_v33 = vunpack.c.h.bf16 %v299_v20 }
  0xf5   :  { %v168_v36 = vsel %vm28_vm0, %v162_v34, 0.0 }
  0xf7   :  { %175 = vadd.xlane.f32.xlu1 %v174_v35 }
  0xf8   :  { %169 = vadd.xlane.f32.xlu0 %v168_v36 }
 0x180   :  { %v173_v37 = vpop.xlane.xlu1 %172 }
 0x181   :  { %v180_v38 = vmul.f32 0.03125, %v173_v37  ;;  %v167_v39 = vpop.xlane.xlu0 %166 }
 0x182   :  { %v178_v40 = vmul.f32 0.03125, %v167_v39 }
 0x183   :  { %v184_v41 = vsub.f32 %v163_v26, %v180_v38 }
 0x184   :  { %v182_v42 = vsub.f32 %v161_v28, %v178_v40  ;;  %v176_v43 = vpop.xlane.xlu1 %175 }
 0x185   :  { %v181_v44 = vmul.f32 0.03125, %v176_v43  ;;  %v170_v45 = vpop.xlane.xlu0 %169  ;;  %v188_v51 = vmul.f32 %v184_v41, %v184_v41 }
 0x186   :  { %v179_v46 = vmul.f32 0.03125, %v170_v45  ;;  %v186_v47 = vmul.f32 %v182_v42, %v182_v42 }
 0x187   :  { %v185_v48 = vsub.f32 %v164_v31, %v181_v44  ;;  %v196_v53 = vsel %vm28_vm0, %v188_v51, 0.0 }
 0x188   :  { %v183_v49 = vsub.f32 %v162_v34, %v179_v46  ;;  %v190_v50 = vsel %vm28_vm0, %v186_v47, 0.0 }
 0x189   :  { %191 = vadd.xlane.f32.xlu0 %v190_v50  ;;  %v189_v55 = vmul.f32 %v185_v48, %v185_v48 }
 0x18a   :  { %v187_v52 = vmul.f32 %v183_v49, %v183_v49 }
 0x18b   :  { %v199_v56 = vsel %vm28_vm0, %v189_v55, 0.0 }
 0x18c   :  { %v193_v54 = vsel %vm28_vm0, %v187_v52, 0.0 }
 0x18d   :  { %197 = vadd.xlane.f32.xlu0 %v196_v53  ;;  %194 = vadd.xlane.f32.xlu1 %v193_v54 }
 0x191   :  { %200 = vadd.xlane.f32.xlu1 %v199_v56 }
 0x216   :  { %v192_v57 = vpop.xlane.xlu0 %191 }
 0x217   :  { %v202_v58 = vmul.f32 0.03125, %v192_v57 }
 0x219   :  { %v206_v59 = vadd.f32 1e-06, %v202_v58 }
 0x21a   :  { %v195_v60 = vpop.xlane.xlu1 %194  ;;  %v198_v61 = vpop.xlane.xlu0 %197 }
 0x21b   :  { %325 = vrsqrt.f32 %v206_v59  ;;  %v203_v62 = vmul.f32 0.03125, %v195_v60  ;;  %v204_v63 = vmul.f32 0.03125, %v198_v61 }
 0x21d   :  { %v207_v1 = vadd.f32 1e-06, %v203_v62  ;;  %v208_v2 = vadd.f32 1e-06, %v204_v63 }
 0x21e   :  { %v201_v3 = vpop.xlane.xlu1 %200 }
 0x21f   :  { %327 = vrsqrt.f32 %v207_v1  ;;  %v205_v5 = vmul.f32 0.03125, %v201_v3 }
 0x220   :  { %329 = vrsqrt.f32 %v208_v2 }
 0x221   :  { %v209_v7 = vadd.f32 1e-06, %v205_v5 }
 0x223   :  { %331 = vrsqrt.f32 %v209_v7 }
 0x225   :  { %v326_v10 = vpop.eup %325 }
 0x226   :  { %v214_v13 = vmul.f32 %v326_v10, %v182_v42 }
 0x228   :  { %v224_v15 = vmul.f32 %v223_v9, %v214_v13 }
 0x229   :  { %v328_v16 = vpop.eup %327 }
 0x22a   :  { %v330_v17 = vpop.eup %329  ;;  %v234_v18 = vadd.f32 %v233_v12, %v224_v15  ;;  %v215_v19 = vmul.f32 %v328_v16, %v183_v49 }
 0x22b   :  { %v216_v21 = vmul.f32 %v330_v17, %v184_v41 }
 0x22c   :  { %v246_v23 = vadd.f32 %v293_v14, %v234_v18  ;;  %v225_v25 = vmul.f32 %v223_v9, %v215_v19 }
 0x22d   :  { %v332_v26 = vpop.eup %331  ;;  %v226_v28 = vmul.f32 %v223_v9, %v216_v21 }
 0x22e   :  { %v287_v22 = vpack.c.bf16 %v246_v23, %v246_v23  ;;  %v235_v29 = vadd.f32 %v233_v12, %v225_v25  ;;  %v217_v30 = vmul.f32 %v332_v26, %v185_v48 }
 0x22f   :  { %v236_v31 = vadd.f32 %v233_v12, %v226_v28 }
 0x230   :  { %267 = vst.msk [vmem:[%s445_s6] sm:$0xf] %vm266_vm2, %v287_v22  ;;  %v247_v32 = vadd.f32 %v294_v24, %v235_v29  ;;  %v227_v34 = vmul.f32 %v223_v9, %v217_v30 }
 0x231   :  { %v248_v35 = vadd.f32 %v297_v27, %v236_v31 }
 0x232   :  { %v288_v36 = vpack.c.bf16 %v247_v32, %v247_v32  ;;  %v237_v37 = vadd.f32 %v233_v12, %v227_v34 }
 0x233   :  { %v289_v38 = vpack.c.bf16 %v248_v35, %v248_v35 }
 0x234   :  { %268 = vst.msk [vmem:[%s445_s6 + $0x4] sm:$0xf] %vm266_vm2, %v288_v36  ;;  %v249_v39 = vadd.f32 %v298_v33, %v237_v37 }
 0x235   :  { %269 = vst.msk [vmem:[%s445_s6 + $0x8] sm:$0xf] %vm266_vm2, %v289_v38 }
 0x236   :  { %v290_v40 = vpack.c.bf16 %v249_v39, %v249_v39 }
 0x238   :  { %270 = vst.msk [vmem:[%s445_s6 + $0xc] sm:$0xf] %vm266_vm2, %v290_v40 }

</bundles_post_ra>
